<compile_context>
chip_gen: v7x
topology: tpu7x:2x2x1
jax: 0.10.0
libtpu: 0.0.40
codegen_flags: <defaults>
</compile_context>

<pallas_src>
import math

import jax
import jax.numpy as jnp
from jax import lax
from jax.experimental import pallas as pl
from jax.experimental.pallas import tpu as pltpu

CFG = dict(
    vocab_size=256,
    context_length=8,
    emb_dim=64,
    hidden_dim=128,
    n_heads=4,
    n_kv_groups=2,
    n_layers=2,
    rope_base=10000.0,
    rope_freq=None,
)
HEAD_DIM = CFG["emb_dim"] // CFG["n_heads"]            # 16
GROUP_SIZE = CFG["n_heads"] // CFG["n_kv_groups"]      # 2
QW = CFG["n_heads"] * HEAD_DIM                         # 64 (valid width of each qkv segment)
SEG = 128                                              # lane-tile padded segment width
HID = CFG["hidden_dim"]                                # 128
N_LAYERS = CFG["n_layers"]
N_HEADS = CFG["n_heads"]
EPS = 1e-5


# ----------------------------- kernel helpers ------------------------------

def _rmsnorm(x_f32, w_2d):
    """RMSNorm in fp32 (matches nn.RMSNorm, eps=1e-5)."""
    var = jnp.mean(x_f32 * x_f32, axis=-1, keepdims=True)
    return (x_f32 * lax.rsqrt(var + EPS)) * w_2d


# ------------------------------ fused kernel --------------------------------

def llama3_kernel(x0_ref, cos_ref, sin_ref, bias_ref, hmask_ref, bones_ref,
                  n1_ref, wqkv_ref, wo_ref, n2_ref, w12_ref, w3_ref,
                  nf_ref, wout_ref, logits_ref):
    BT = x0_ref.shape[0]

    x = x0_ref[...].astype(jnp.float32)                 # residual stream, f32
    cos = cos_ref[...]                                   # (BT, SEG) f32, pad lanes 0
    sin = sin_ref[...]
    bias = bias_ref[...]                                 # (BT, H*BT) f32 causal/-1e30 mask
    hmask = hmask_ref[...]                               # (H*BT, SEG) f32 head-block mask
    bones = bones_ref[...]                               # (H*BT, H*BT) bf16 per-head block-diag

    for l in range(N_LAYERS):                            # static unrolled layer loop
        # ---------------- attention block ----------------
        h = _rmsnorm(x, n1_ref[l]).astype(jnp.bfloat16)
        # fused [q | k | v | q@R | k@R] projection (each segment 128-lane padded,
        # softmax scale folded into the q columns)
        qkv = jnp.dot(h, wqkv_ref[l], preferred_element_type=jnp.float32)   # (BT, 5*SEG)
        q = qkv[:, 0 * SEG:1 * SEG] * cos + qkv[:, 3 * SEG:4 * SEG] * sin   # RoPE'd q
        k = qkv[:, 1 * SEG:2 * SEG] * cos + qkv[:, 4 * SEG:5 * SEG] * sin   # RoPE'd k
        v = qkv[:, 2 * SEG:3 * SEG]

        # Block-structured grouped attention: replicate k/v rows per head and
        # mask off other heads' feature blocks (pad lanes are already zero),
        # so per-head scores/context come out of plain 2-D matmuls.
        kb = (jnp.broadcast_to(k[None], (N_HEADS, BT, SEG))
              .reshape(N_HEADS * BT, SEG) * hmask).astype(jnp.bfloat16)
        vb = (jnp.broadcast_to(v[None], (N_HEADS, BT, SEG))
              .reshape(N_HEADS * BT, SEG) * hmask).astype(jnp.bfloat16)

        s = lax.dot_general(q.astype(jnp.bfloat16), kb,
                            (((1,), (1,)), ((), ())),
                            preferred_element_type=jnp.float32)             # (BT, H*BT)
        e = jnp.exp(s + bias)                            # f32; masked entries -> 0 exactly
        denom = jnp.dot(e.astype(jnp.bfloat16), bones,
                        preferred_element_type=jnp.float32)                 # per-head row sums
        p = (e * pl.reciprocal(denom, approx=True)).astype(jnp.bfloat16)
        ctx = jnp.dot(p, vb, preferred_element_type=jnp.float32).astype(jnp.bfloat16)  # (BT, SEG)
        x = x + jnp.dot(ctx, wo_ref[l], preferred_element_type=jnp.float32)  # f32 residual add

        # ---------------- feed-forward block ----------------
        h2 = _rmsnorm(x, n2_ref[l]).astype(jnp.bfloat16)
        ab = jnp.dot(h2, w12_ref[l], preferred_element_type=jnp.float32)     # (BT, 2*HID)
        a = ab[:, :HID]
        b = ab[:, HID:]
        g = ((a * jax.nn.sigmoid(a)) * b).astype(jnp.bfloat16)               # SiLU(fc1)*fc2
        x = x + jnp.dot(g, w3_ref[l], preferred_element_type=jnp.float32)

    # ---------------- final norm + LM head ----------------
    hf = _rmsnorm(x, nf_ref[...]).astype(jnp.bfloat16)
    logits = jnp.dot(hf, wout_ref[...], preferred_element_type=jnp.float32)
    logits_ref[...] = logits.astype(jnp.bfloat16)


# ------------------------------ parameters ----------------------------------

def compute_rope(head_dim, base, T):
    inv_freq = 1.0 / (base ** (jnp.arange(0, head_dim, 2, dtype=jnp.float32) / head_dim))
    pos = jnp.arange(T, dtype=jnp.float32)
    angles = pos[:, None] * inv_freq[None, :]            # (T, hd/2)
    angles = jnp.concatenate([angles, angles], axis=-1)  # (T, hd)
    return jnp.cos(angles), jnp.sin(angles)


def init_params(key):
    V, D, Hd = CFG["vocab_size"], CFG["emb_dim"], CFG["hidden_dim"]
    KV = CFG["n_kv_groups"] * HEAD_DIM

    def dense(k, shape):
        return (0.02 * jax.random.normal(k, shape, dtype=jnp.float32)).astype(jnp.bfloat16)

    keys = jax.random.split(key, 2 + 7 * CFG["n_layers"])
    params = {"tok_emb": dense(keys[0], (V, D))}
    layers = []
    ki = 1
    for _ in range(CFG["n_layers"]):
        layers.append(dict(
            n1=jnp.ones((1, D), jnp.float32),            # nn.RMSNorm init = ones
            wq=dense(keys[ki + 0], (D, D)),
            wk=dense(keys[ki + 1], (D, KV)),
            wv=dense(keys[ki + 2], (D, KV)),
            wo=dense(keys[ki + 3], (D, D)),
            n2=jnp.ones((1, D), jnp.float32),
            w1=dense(keys[ki + 4], (D, Hd)),
            w2=dense(keys[ki + 5], (D, Hd)),
            w3=dense(keys[ki + 6], (Hd, D)),
        ))
        ki += 7
    params["layers"] = layers
    params["nf"] = jnp.ones((1, D), jnp.float32)
    params["wout"] = dense(keys[ki], (D, V))
    return params


def pack_params(params, B):
    """Stack per-layer weights, fold RoPE rotation / softmax scale / GQA
    expansion into the fused QKV weight (128-lane padded segments), and build
    the resident attention constants."""
    D, H, KVG, HD_ = CFG["emb_dim"], CFG["n_heads"], CFG["n_kv_groups"], HEAD_DIM
    T = CFG["context_length"]
    BT = B * T
    scale = 1.0 / math.sqrt(HD_)

    half = HD_ // 2
    R = jnp.zeros((HD_, HD_), jnp.float32)
    R = R.at[half:, :half].set(-jnp.eye(half, dtype=jnp.float32))
    R = R.at[:half, half:].set(jnp.eye(half, dtype=jnp.float32))

    def expand_kv(w):                                    # (D, KVG*hd) -> (D, H*hd)
        w3d = w.astype(jnp.float32).reshape(D, KVG, HD_)
        return jnp.repeat(w3d, GROUP_SIZE, axis=1).reshape(D, H * HD_)

    def rotate_cols(w):                                  # apply rotate-half matrix per head
        w3d = w.reshape(D, H, HD_)
        return jnp.einsum('dhk,ke->dhe', w3d, R).reshape(D, H * HD_)

    def pad_lanes(a, width=SEG):                         # (rows, QW) -> (rows, width), zero pad
        return jnp.pad(a, ((0, 0), (0, width - a.shape[1])))

    wqkv_l, wo_l, w12_l, w3_l, n1_l, n2_l = [], [], [], [], [], []
    for layer in params["layers"]:
        wq = layer["wq"].astype(jnp.float32) * scale
        wk = expand_kv(layer["wk"])
        wv = expand_kv(layer["wv"])
        wq_r = rotate_cols(wq)
        wk_r = rotate_cols(wk)
        wqkv = jnp.concatenate([pad_lanes(wq), pad_lanes(wk), pad_lanes(wv),
                                pad_lanes(wq_r), pad_lanes(wk_r)], axis=1)
        wqkv_l.append(wqkv.astype(jnp.bfloat16))                       # (D, 5*SEG)
        wo_pad = jnp.pad(layer["wo"].astype(jnp.float32), ((0, SEG - QW), (0, 0)))
        wo_l.append(wo_pad.astype(jnp.bfloat16))                       # (SEG, D)
        w12_l.append(jnp.concatenate([layer["w1"].astype(jnp.float32),
                                      layer["w2"].astype(jnp.float32)],
                                     axis=1).astype(jnp.bfloat16))     # (D, 2*HID)
        w3_l.append(layer["w3"])
        n1_l.append(layer["n1"][None])
        n2_l.append(layer["n2"][None])

    packed = dict(
        tok_emb=params["tok_emb"],
        wqkv=jnp.stack(wqkv_l),                          # (L, D, 5*SEG)
        wo=jnp.stack(wo_l),                              # (L, SEG, D)
        w12=jnp.stack(w12_l),                            # (L, D, 2*HID)
        w3=jnp.stack(w3_l),                              # (L, HID, D)
        n1=jnp.concatenate(n1_l, axis=0),                # (L, 1, D)
        n2=jnp.concatenate(n2_l, axis=0),                # (L, 1, D)
        nf=params["nf"],                                 # (1, D)
        wout=params["wout"],                             # (D, V)
    )

    cos, sin = compute_rope(HD_, CFG["rope_base"], T)    # (T, hd)
    cos_full = jnp.tile(jnp.tile(cos, (1, H)), (B, 1))   # (BT, QW)
    sin_full = jnp.tile(jnp.tile(sin, (1, H)), (B, 1))
    packed["cos"] = pad_lanes(cos_full)                  # (BT, SEG) f32
    packed["sin"] = pad_lanes(sin_full)

    r = jnp.arange(BT)
    allowed = (r[None, :] <= r[:, None]) & ((r[:, None] // T) == (r[None, :] // T))
    bias = jnp.where(allowed, 0.0, -1e30).astype(jnp.float32)        # (BT, BT)
    packed["bias"] = jnp.tile(bias, (1, H))                           # (BT, H*BT)

    rows = jnp.arange(H * BT)
    cols = jnp.arange(SEG)
    packed["hmask"] = ((rows[:, None] // BT) == (cols[None, :] // HD_)).astype(jnp.float32)
    cc = jnp.arange(H * BT)
    packed["bones"] = ((cc[:, None] // BT) == (cc[None, :] // BT)).astype(jnp.bfloat16)
    return packed


# ------------------------------ forward --------------------------------------

def llama3_forward(packed, in_idx):
    B, T = in_idx.shape
    D, V = CFG["emb_dim"], CFG["vocab_size"]
    BT = B * T

    # token embedding gather stays in plain JAX (trivial index op)
    x = packed["tok_emb"][in_idx].reshape(BT, D).astype(jnp.bfloat16)

    def full(arr):
        nd = arr.ndim
        return pl.BlockSpec(arr.shape, lambda i, _n=nd: (0,) * _n)

    args = (x, packed["cos"], packed["sin"], packed["bias"], packed["hmask"],
            packed["bones"], packed["n1"], packed["wqkv"], packed["wo"],
            packed["n2"], packed["w12"], packed["w3"], packed["nf"], packed["wout"])

    logits = pl.pallas_call(
        llama3_kernel,
        out_shape=jax.ShapeDtypeStruct((BT, V), jnp.bfloat16),
        grid=(1,),
        in_specs=[full(a) for a in args],
        out_specs=pl.BlockSpec((BT, V), lambda i: (0, 0)),
        compiler_params=pltpu.CompilerParams(dimension_semantics=("arbitrary",)),
    )(*args)

    return logits.reshape(B, T, V)


if __name__ == "__main__":
    B, T = 2, CFG["context_length"]
    key = jax.random.PRNGKey(0)
    in_idx = jax.random.randint(key, (B, T), 0, CFG["vocab_size"])
    params = init_params(jax.random.PRNGKey(0))
    packed = pack_params(params, B)

    logits = llama3_forward(packed, in_idx)
    logits = jax.block_until_ready(logits)
    assert logits.shape == (B, T, CFG["vocab_size"])
    assert logits.dtype == jnp.bfloat16
    assert bool(jnp.all(jnp.isfinite(logits.astype(jnp.float32))))
    print("KERNEL_OK")
</pallas_src>

<mosaic_0001>
module attributes {stable_mosaic.version = 11 : i64} {
  func.func @llama3_kernel(%arg0: i32, %arg1: memref<16x64xbf16, #tpu.memory_space<vmem>>, %arg2: memref<16x128xf32, #tpu.memory_space<vmem>>, %arg3: memref<16x128xf32, #tpu.memory_space<vmem>>, %arg4: memref<16x64xf32, #tpu.memory_space<vmem>>, %arg5: memref<64x128xf32, #tpu.memory_space<vmem>>, %arg6: memref<64x64xbf16, #tpu.memory_space<vmem>>, %arg7: memref<2x1x64xf32, #tpu.memory_space<vmem>>, %arg8: memref<2x64x640xbf16, #tpu.memory_space<vmem>>, %arg9: memref<2x128x64xbf16, #tpu.memory_space<vmem>>, %arg10: memref<2x1x64xf32, #tpu.memory_space<vmem>>, %arg11: memref<2x64x256xbf16, #tpu.memory_space<vmem>>, %arg12: memref<2x128x64xbf16, #tpu.memory_space<vmem>>, %arg13: memref<1x64xf32, #tpu.memory_space<vmem>>, %arg14: memref<64x256xbf16, #tpu.memory_space<vmem>>, %arg15: memref<16x256xbf16, #tpu.memory_space<vmem>>) attributes {dimension_semantics = [#tpu.dimension_semantics<arbitrary>], iteration_bounds = array<i64: 1>, scalar_prefetch = 0 : i64, scratch_operands = 0 : i64, tpu.core_type = #tpu.core_type<tc>, window_params = [{pipeline_mode = #tpu.pipeline_mode<synchronous>, transform_indices = @transform_0, window_bounds = array<i64: 16, 64>}, {pipeline_mode = #tpu.pipeline_mode<synchronous>, transform_indices = @transform_1, window_bounds = array<i64: 16, 128>}, {pipeline_mode = #tpu.pipeline_mode<synchronous>, transform_indices = @transform_2, window_bounds = array<i64: 16, 128>}, {pipeline_mode = #tpu.pipeline_mode<synchronous>, transform_indices = @transform_3, window_bounds = array<i64: 16, 64>}, {pipeline_mode = #tpu.pipeline_mode<synchronous>, transform_indices = @transform_4, window_bounds = array<i64: 64, 128>}, {pipeline_mode = #tpu.pipeline_mode<synchronous>, transform_indices = @transform_5, window_bounds = array<i64: 64, 64>}, {pipeline_mode = #tpu.pipeline_mode<synchronous>, transform_indices = @transform_6, window_bounds = array<i64: 2, 1, 64>}, {pipeline_mode = #tpu.pipeline_mode<synchronous>, transform_indices = @transform_7, window_bounds = array<i64: 2, 64, 640>}, {pipeline_mode = #tpu.pipeline_mode<synchronous>, transform_indices = @transform_8, window_bounds = array<i64: 2, 128, 64>}, {pipeline_mode = #tpu.pipeline_mode<synchronous>, transform_indices = @transform_9, window_bounds = array<i64: 2, 1, 64>}, {pipeline_mode = #tpu.pipeline_mode<synchronous>, transform_indices = @transform_10, window_bounds = array<i64: 2, 64, 256>}, {pipeline_mode = #tpu.pipeline_mode<synchronous>, transform_indices = @transform_11, window_bounds = array<i64: 2, 128, 64>}, {pipeline_mode = #tpu.pipeline_mode<synchronous>, transform_indices = @transform_12, window_bounds = array<i64: 1, 64>}, {pipeline_mode = #tpu.pipeline_mode<synchronous>, transform_indices = @transform_13, window_bounds = array<i64: 64, 256>}, {pipeline_mode = #tpu.pipeline_mode<synchronous>, transform_indices = @transform_14, window_bounds = array<i64: 16, 256>}]} {
    %c0 = arith.constant 0 : index
    %c0_0 = arith.constant 0 : index
    %0 = vector.load %arg1[%c0, %c0_0] : memref<16x64xbf16, #tpu.memory_space<vmem>>, vector<16x64xbf16>
    %1 = arith.extf %0 : vector<16x64xbf16> to vector<16x64xf32>
    %c0_1 = arith.constant 0 : index
    %c0_2 = arith.constant 0 : index
    %2 = vector.load %arg2[%c0_1, %c0_2] : memref<16x128xf32, #tpu.memory_space<vmem>>, vector<16x128xf32>
    %c0_3 = arith.constant 0 : index
    %c0_4 = arith.constant 0 : index
    %3 = vector.load %arg3[%c0_3, %c0_4] : memref<16x128xf32, #tpu.memory_space<vmem>>, vector<16x128xf32>
    %c0_5 = arith.constant 0 : index
    %c0_6 = arith.constant 0 : index
    %4 = vector.load %arg4[%c0_5, %c0_6] : memref<16x64xf32, #tpu.memory_space<vmem>>, vector<16x64xf32>
    %c0_7 = arith.constant 0 : index
    %c0_8 = arith.constant 0 : index
    %5 = vector.load %arg5[%c0_7, %c0_8] : memref<64x128xf32, #tpu.memory_space<vmem>>, vector<64x128xf32>
    %c0_9 = arith.constant 0 : index
    %c0_10 = arith.constant 0 : index
    %6 = vector.load %arg6[%c0_9, %c0_10] : memref<64x64xbf16, #tpu.memory_space<vmem>>, vector<64x64xbf16>
    %c0_11 = arith.constant 0 : index
    %c0_12 = arith.constant 0 : index
    %c0_13 = arith.constant 0 : index
    %7 = vector.load %arg7[%c0_11, %c0_12, %c0_13] : memref<2x1x64xf32, #tpu.memory_space<vmem>>, vector<1x1x64xf32>
    %8 = vector.shape_cast %7 : vector<1x1x64xf32> to vector<1x64xf32>
    %9 = arith.mulf %1, %1 : vector<16x64xf32>
    %cst = arith.constant dense<0.000000e+00> : vector<16xf32>
    %10 = vector.multi_reduction <add>, %9, %cst [1] : vector<16x64xf32> to vector<16xf32>
    %11 = vector.shape_cast %10 : vector<16xf32> to vector<16x1xf32>
    %cst_14 = arith.constant 6.400000e+01 : f32
    %12 = vector.broadcast %cst_14 : f32 to vector<16x1xf32>
    %13 = arith.divf %11, %12 : vector<16x1xf32>
    %cst_15 = arith.constant 9.99999974E-6 : f32
    %14 = vector.broadcast %cst_15 : f32 to vector<16x1xf32>
    %15 = arith.addf %13, %14 : vector<16x1xf32>
    %16 = math.rsqrt %15 : vector<16x1xf32>
    %17 = vector.broadcast %16 : vector<16x1xf32> to vector<16x64xf32>
    %18 = arith.mulf %1, %17 : vector<16x64xf32>
    %19 = vector.broadcast %8 : vector<1x64xf32> to vector<16x64xf32>
    %20 = arith.mulf %18, %19 : vector<16x64xf32>
    %21 = arith.truncf %20 : vector<16x64xf32> to vector<16x64xbf16>
    %c0_16 = arith.constant 0 : index
    %c0_17 = arith.constant 0 : index
    %c0_18 = arith.constant 0 : index
    %22 = vector.load %arg8[%c0_16, %c0_17, %c0_18] : memref<2x64x640xbf16, #tpu.memory_space<vmem>>, vector<1x64x640xbf16>
    %23 = vector.shape_cast %22 : vector<1x64x640xbf16> to vector<64x640xbf16>
    %cst_19 = arith.constant dense<0.000000e+00> : vector<16x640xf32>
    %24 = tpu.matmul %21, %23, %cst_19 {dimension_numbers = #tpu.dot_dimension_numbers<[1], [0], [0], [1], [0, 0, 1, 1], [], []>} : vector<16x64xbf16>, vector<64x640xbf16>, vector<16x640xf32> -> vector<16x640xf32>
    %25 = vector.extract_strided_slice %24 {offsets = [0, 0], sizes = [16, 128], strides = [1, 1]} : vector<16x640xf32> to vector<16x128xf32>
    %26 = arith.mulf %25, %2 : vector<16x128xf32>
    %27 = vector.extract_strided_slice %24 {offsets = [0, 384], sizes = [16, 128], strides = [1, 1]} : vector<16x640xf32> to vector<16x128xf32>
    %28 = arith.mulf %27, %3 : vector<16x128xf32>
    %29 = arith.addf %26, %28 : vector<16x128xf32>
    %30 = vector.extract_strided_slice %24 {offsets = [0, 128], sizes = [16, 128], strides = [1, 1]} : vector<16x640xf32> to vector<16x128xf32>
    %31 = arith.mulf %30, %2 : vector<16x128xf32>
    %32 = vector.extract_strided_slice %24 {offsets = [0, 512], sizes = [16, 128], strides = [1, 1]} : vector<16x640xf32> to vector<16x128xf32>
    %33 = arith.mulf %32, %3 : vector<16x128xf32>
    %34 = arith.addf %31, %33 : vector<16x128xf32>
    %35 = vector.extract_strided_slice %24 {offsets = [0, 256], sizes = [16, 128], strides = [1, 1]} : vector<16x640xf32> to vector<16x128xf32>
    %36 = vector.shape_cast %34 : vector<16x128xf32> to vector<1x16x128xf32>
    %37 = vector.shape_cast %36 : vector<1x16x128xf32> to vector<1x16x128xf32>
    %38 = vector.broadcast %37 : vector<1x16x128xf32> to vector<4x16x128xf32>
    %39 = vector.shape_cast %38 : vector<4x16x128xf32> to vector<64x128xf32>
    %40 = arith.mulf %39, %5 : vector<64x128xf32>
    %41 = arith.truncf %40 : vector<64x128xf32> to vector<64x128xbf16>
    %42 = vector.shape_cast %35 : vector<16x128xf32> to vector<1x16x128xf32>
    %43 = vector.shape_cast %42 : vector<1x16x128xf32> to vector<1x16x128xf32>
    %44 = vector.broadcast %43 : vector<1x16x128xf32> to vector<4x16x128xf32>
    %45 = vector.shape_cast %44 : vector<4x16x128xf32> to vector<64x128xf32>
    %46 = arith.mulf %45, %5 : vector<64x128xf32>
    %47 = arith.truncf %46 : vector<64x128xf32> to vector<64x128xbf16>
    %48 = arith.truncf %29 : vector<16x128xf32> to vector<16x128xbf16>
    %cst_20 = arith.constant dense<0.000000e+00> : vector<16x64xf32>
    %49 = tpu.matmul %48, %41, %cst_20 {dimension_numbers = #tpu.dot_dimension_numbers<[1], [1], [0], [0], [0, 0, 1, 0], [], []>} : vector<16x128xbf16>, vector<64x128xbf16>, vector<16x64xf32> -> vector<16x64xf32>
    %50 = arith.addf %49, %4 : vector<16x64xf32>
    %51 = math.exp %50 : vector<16x64xf32>
    %52 = arith.truncf %51 : vector<16x64xf32> to vector<16x64xbf16>
    %cst_21 = arith.constant dense<0.000000e+00> : vector<16x64xf32>
    %53 = tpu.matmul %52, %6, %cst_21 {dimension_numbers = #tpu.dot_dimension_numbers<[1], [0], [0], [1], [0, 0, 1, 1], [], []>} : vector<16x64xbf16>, vector<64x64xbf16>, vector<16x64xf32> -> vector<16x64xf32>
    %54 = tpu.reciprocal %53 {approx = true} : vector<16x64xf32> -> vector<16x64xf32>
    %55 = arith.mulf %51, %54 : vector<16x64xf32>
    %56 = arith.truncf %55 : vector<16x64xf32> to vector<16x64xbf16>
    %cst_22 = arith.constant dense<0.000000e+00> : vector<16x128xf32>
    %57 = tpu.matmul %56, %47, %cst_22 {dimension_numbers = #tpu.dot_dimension_numbers<[1], [0], [0], [1], [0, 0, 1, 1], [], []>} : vector<16x64xbf16>, vector<64x128xbf16>, vector<16x128xf32> -> vector<16x128xf32>
    %58 = arith.truncf %57 : vector<16x128xf32> to vector<16x128xbf16>
    %c0_23 = arith.constant 0 : index
    %c0_24 = arith.constant 0 : index
    %c0_25 = arith.constant 0 : index
    %59 = vector.load %arg9[%c0_23, %c0_24, %c0_25] : memref<2x128x64xbf16, #tpu.memory_space<vmem>>, vector<1x128x64xbf16>
    %60 = vector.shape_cast %59 : vector<1x128x64xbf16> to vector<128x64xbf16>
    %cst_26 = arith.constant dense<0.000000e+00> : vector<16x64xf32>
    %61 = tpu.matmul %58, %60, %cst_26 {dimension_numbers = #tpu.dot_dimension_numbers<[1], [0], [0], [1], [0, 0, 1, 1], [], []>} : vector<16x128xbf16>, vector<128x64xbf16>, vector<16x64xf32> -> vector<16x64xf32>
    %62 = arith.addf %1, %61 : vector<16x64xf32>
    %c0_27 = arith.constant 0 : index
    %c0_28 = arith.constant 0 : index
    %c0_29 = arith.constant 0 : index
    %63 = vector.load %arg10[%c0_27, %c0_28, %c0_29] : memref<2x1x64xf32, #tpu.memory_space<vmem>>, vector<1x1x64xf32>
    %64 = vector.shape_cast %63 : vector<1x1x64xf32> to vector<1x64xf32>
    %65 = arith.mulf %62, %62 : vector<16x64xf32>
    %cst_30 = arith.constant dense<0.000000e+00> : vector<16xf32>
    %66 = vector.multi_reduction <add>, %65, %cst_30 [1] : vector<16x64xf32> to vector<16xf32>
    %67 = vector.shape_cast %66 : vector<16xf32> to vector<16x1xf32>
    %cst_31 = arith.constant 6.400000e+01 : f32
    %68 = vector.broadcast %cst_31 : f32 to vector<16x1xf32>
    %69 = arith.divf %67, %68 : vector<16x1xf32>
    %cst_32 = arith.constant 9.99999974E-6 : f32
    %70 = vector.broadcast %cst_32 : f32 to vector<16x1xf32>
    %71 = arith.addf %69, %70 : vector<16x1xf32>
    %72 = math.rsqrt %71 : vector<16x1xf32>
    %73 = vector.broadcast %72 : vector<16x1xf32> to vector<16x64xf32>
    %74 = arith.mulf %62, %73 : vector<16x64xf32>
    %75 = vector.broadcast %64 : vector<1x64xf32> to vector<16x64xf32>
    %76 = arith.mulf %74, %75 : vector<16x64xf32>
    %77 = arith.truncf %76 : vector<16x64xf32> to vector<16x64xbf16>
    %c0_33 = arith.constant 0 : index
    %c0_34 = arith.constant 0 : index
    %c0_35 = arith.constant 0 : index
    %78 = vector.load %arg11[%c0_33, %c0_34, %c0_35] : memref<2x64x256xbf16, #tpu.memory_space<vmem>>, vector<1x64x256xbf16>
    %79 = vector.shape_cast %78 : vector<1x64x256xbf16> to vector<64x256xbf16>
    %cst_36 = arith.constant dense<0.000000e+00> : vector<16x256xf32>
    %80 = tpu.matmul %77, %79, %cst_36 {dimension_numbers = #tpu.dot_dimension_numbers<[1], [0], [0], [1], [0, 0, 1, 1], [], []>} : vector<16x64xbf16>, vector<64x256xbf16>, vector<16x256xf32> -> vector<16x256xf32>
    %81 = vector.extract_strided_slice %80 {offsets = [0, 0], sizes = [16, 128], strides = [1, 1]} : vector<16x256xf32> to vector<16x128xf32>
    %82 = vector.extract_strided_slice %80 {offsets = [0, 128], sizes = [16, 128], strides = [1, 1]} : vector<16x256xf32> to vector<16x128xf32>
    %83 = arith.negf %81 : vector<16x128xf32>
    %84 = math.exp %83 : vector<16x128xf32>
    %cst_37 = arith.constant 1.000000e+00 : f32
    %85 = vector.broadcast %cst_37 : f32 to vector<16x128xf32>
    %86 = arith.addf %85, %84 : vector<16x128xf32>
    %87 = arith.divf %85, %86 : vector<16x128xf32>
    %88 = arith.mulf %81, %87 : vector<16x128xf32>
    %89 = arith.mulf %88, %82 : vector<16x128xf32>
    %90 = arith.truncf %89 : vector<16x128xf32> to vector<16x128xbf16>
    %c0_38 = arith.constant 0 : index
    %c0_39 = arith.constant 0 : index
    %c0_40 = arith.constant 0 : index
    %91 = vector.load %arg12[%c0_38, %c0_39, %c0_40] : memref<2x128x64xbf16, #tpu.memory_space<vmem>>, vector<1x128x64xbf16>
    %92 = vector.shape_cast %91 : vector<1x128x64xbf16> to vector<128x64xbf16>
    %cst_41 = arith.constant dense<0.000000e+00> : vector<16x64xf32>
    %93 = tpu.matmul %90, %92, %cst_41 {dimension_numbers = #tpu.dot_dimension_numbers<[1], [0], [0], [1], [0, 0, 1, 1], [], []>} : vector<16x128xbf16>, vector<128x64xbf16>, vector<16x64xf32> -> vector<16x64xf32>
    %94 = arith.addf %62, %93 : vector<16x64xf32>
    %c1 = arith.constant 1 : index
    %c0_42 = arith.constant 0 : index
    %c0_43 = arith.constant 0 : index
    %95 = vector.load %arg7[%c1, %c0_42, %c0_43] : memref<2x1x64xf32, #tpu.memory_space<vmem>>, vector<1x1x64xf32>
    %96 = vector.shape_cast %95 : vector<1x1x64xf32> to vector<1x64xf32>
    %97 = arith.mulf %94, %94 : vector<16x64xf32>
    %cst_44 = arith.constant dense<0.000000e+00> : vector<16xf32>
    %98 = vector.multi_reduction <add>, %97, %cst_44 [1] : vector<16x64xf32> to vector<16xf32>
    %99 = vector.shape_cast %98 : vector<16xf32> to vector<16x1xf32>
    %cst_45 = arith.constant 6.400000e+01 : f32
    %100 = vector.broadcast %cst_45 : f32 to vector<16x1xf32>
    %101 = arith.divf %99, %100 : vector<16x1xf32>
    %cst_46 = arith.constant 9.99999974E-6 : f32
    %102 = vector.broadcast %cst_46 : f32 to vector<16x1xf32>
    %103 = arith.addf %101, %102 : vector<16x1xf32>
    %104 = math.rsqrt %103 : vector<16x1xf32>
    %105 = vector.broadcast %104 : vector<16x1xf32> to vector<16x64xf32>
    %106 = arith.mulf %94, %105 : vector<16x64xf32>
    %107 = vector.broadcast %96 : vector<1x64xf32> to vector<16x64xf32>
    %108 = arith.mulf %106, %107 : vector<16x64xf32>
    %109 = arith.truncf %108 : vector<16x64xf32> to vector<16x64xbf16>
    %c1_47 = arith.constant 1 : index
    %c0_48 = arith.constant 0 : index
    %c0_49 = arith.constant 0 : index
    %110 = vector.load %arg8[%c1_47, %c0_48, %c0_49] : memref<2x64x640xbf16, #tpu.memory_space<vmem>>, vector<1x64x640xbf16>
    %111 = vector.shape_cast %110 : vector<1x64x640xbf16> to vector<64x640xbf16>
    %cst_50 = arith.constant dense<0.000000e+00> : vector<16x640xf32>
    %112 = tpu.matmul %109, %111, %cst_50 {dimension_numbers = #tpu.dot_dimension_numbers<[1], [0], [0], [1], [0, 0, 1, 1], [], []>} : vector<16x64xbf16>, vector<64x640xbf16>, vector<16x640xf32> -> vector<16x640xf32>
    %113 = vector.extract_strided_slice %112 {offsets = [0, 0], sizes = [16, 128], strides = [1, 1]} : vector<16x640xf32> to vector<16x128xf32>
    %114 = arith.mulf %113, %2 : vector<16x128xf32>
    %115 = vector.extract_strided_slice %112 {offsets = [0, 384], sizes = [16, 128], strides = [1, 1]} : vector<16x640xf32> to vector<16x128xf32>
    %116 = arith.mulf %115, %3 : vector<16x128xf32>
    %117 = arith.addf %114, %116 : vector<16x128xf32>
    %118 = vector.extract_strided_slice %112 {offsets = [0, 128], sizes = [16, 128], strides = [1, 1]} : vector<16x640xf32> to vector<16x128xf32>
    %119 = arith.mulf %118, %2 : vector<16x128xf32>
    %120 = vector.extract_strided_slice %112 {offsets = [0, 512], sizes = [16, 128], strides = [1, 1]} : vector<16x640xf32> to vector<16x128xf32>
    %121 = arith.mulf %120, %3 : vector<16x128xf32>
    %122 = arith.addf %119, %121 : vector<16x128xf32>
    %123 = vector.extract_strided_slice %112 {offsets = [0, 256], sizes = [16, 128], strides = [1, 1]} : vector<16x640xf32> to vector<16x128xf32>
    %124 = vector.shape_cast %122 : vector<16x128xf32> to vector<1x16x128xf32>
    %125 = vector.shape_cast %124 : vector<1x16x128xf32> to vector<1x16x128xf32>
    %126 = vector.broadcast %125 : vector<1x16x128xf32> to vector<4x16x128xf32>
    %127 = vector.shape_cast %126 : vector<4x16x128xf32> to vector<64x128xf32>
    %128 = arith.mulf %127, %5 : vector<64x128xf32>
    %129 = arith.truncf %128 : vector<64x128xf32> to vector<64x128xbf16>
    %130 = vector.shape_cast %123 : vector<16x128xf32> to vector<1x16x128xf32>
    %131 = vector.shape_cast %130 : vector<1x16x128xf32> to vector<1x16x128xf32>
    %132 = vector.broadcast %131 : vector<1x16x128xf32> to vector<4x16x128xf32>
    %133 = vector.shape_cast %132 : vector<4x16x128xf32> to vector<64x128xf32>
    %134 = arith.mulf %133, %5 : vector<64x128xf32>
    %135 = arith.truncf %134 : vector<64x128xf32> to vector<64x128xbf16>
    %136 = arith.truncf %117 : vector<16x128xf32> to vector<16x128xbf16>
    %cst_51 = arith.constant dense<0.000000e+00> : vector<16x64xf32>
    %137 = tpu.matmul %136, %129, %cst_51 {dimension_numbers = #tpu.dot_dimension_numbers<[1], [1], [0], [0], [0, 0, 1, 0], [], []>} : vector<16x128xbf16>, vector<64x128xbf16>, vector<16x64xf32> -> vector<16x64xf32>
    %138 = arith.addf %137, %4 : vector<16x64xf32>
    %139 = math.exp %138 : vector<16x64xf32>
    %140 = arith.truncf %139 : vector<16x64xf32> to vector<16x64xbf16>
    %cst_52 = arith.constant dense<0.000000e+00> : vector<16x64xf32>
    %141 = tpu.matmul %140, %6, %cst_52 {dimension_numbers = #tpu.dot_dimension_numbers<[1], [0], [0], [1], [0, 0, 1, 1], [], []>} : vector<16x64xbf16>, vector<64x64xbf16>, vector<16x64xf32> -> vector<16x64xf32>
    %142 = tpu.reciprocal %141 {approx = true} : vector<16x64xf32> -> vector<16x64xf32>
    %143 = arith.mulf %139, %142 : vector<16x64xf32>
    %144 = arith.truncf %143 : vector<16x64xf32> to vector<16x64xbf16>
    %cst_53 = arith.constant dense<0.000000e+00> : vector<16x128xf32>
    %145 = tpu.matmul %144, %135, %cst_53 {dimension_numbers = #tpu.dot_dimension_numbers<[1], [0], [0], [1], [0, 0, 1, 1], [], []>} : vector<16x64xbf16>, vector<64x128xbf16>, vector<16x128xf32> -> vector<16x128xf32>
    %146 = arith.truncf %145 : vector<16x128xf32> to vector<16x128xbf16>
    %c1_54 = arith.constant 1 : index
    %c0_55 = arith.constant 0 : index
    %c0_56 = arith.constant 0 : index
    %147 = vector.load %arg9[%c1_54, %c0_55, %c0_56] : memref<2x128x64xbf16, #tpu.memory_space<vmem>>, vector<1x128x64xbf16>
    %148 = vector.shape_cast %147 : vector<1x128x64xbf16> to vector<128x64xbf16>
    %cst_57 = arith.constant dense<0.000000e+00> : vector<16x64xf32>
    %149 = tpu.matmul %146, %148, %cst_57 {dimension_numbers = #tpu.dot_dimension_numbers<[1], [0], [0], [1], [0, 0, 1, 1], [], []>} : vector<16x128xbf16>, vector<128x64xbf16>, vector<16x64xf32> -> vector<16x64xf32>
    %150 = arith.addf %94, %149 : vector<16x64xf32>
    %c1_58 = arith.constant 1 : index
    %c0_59 = arith.constant 0 : index
    %c0_60 = arith.constant 0 : index
    %151 = vector.load %arg10[%c1_58, %c0_59, %c0_60] : memref<2x1x64xf32, #tpu.memory_space<vmem>>, vector<1x1x64xf32>
    %152 = vector.shape_cast %151 : vector<1x1x64xf32> to vector<1x64xf32>
    %153 = arith.mulf %150, %150 : vector<16x64xf32>
    %cst_61 = arith.constant dense<0.000000e+00> : vector<16xf32>
    %154 = vector.multi_reduction <add>, %153, %cst_61 [1] : vector<16x64xf32> to vector<16xf32>
    %155 = vector.shape_cast %154 : vector<16xf32> to vector<16x1xf32>
    %cst_62 = arith.constant 6.400000e+01 : f32
    %156 = vector.broadcast %cst_62 : f32 to vector<16x1xf32>
    %157 = arith.divf %155, %156 : vector<16x1xf32>
    %cst_63 = arith.constant 9.99999974E-6 : f32
    %158 = vector.broadcast %cst_63 : f32 to vector<16x1xf32>
    %159 = arith.addf %157, %158 : vector<16x1xf32>
    %160 = math.rsqrt %159 : vector<16x1xf32>
    %161 = vector.broadcast %160 : vector<16x1xf32> to vector<16x64xf32>
    %162 = arith.mulf %150, %161 : vector<16x64xf32>
    %163 = vector.broadcast %152 : vector<1x64xf32> to vector<16x64xf32>
    %164 = arith.mulf %162, %163 : vector<16x64xf32>
    %165 = arith.truncf %164 : vector<16x64xf32> to vector<16x64xbf16>
    %c1_64 = arith.constant 1 : index
    %c0_65 = arith.constant 0 : index
    %c0_66 = arith.constant 0 : index
    %166 = vector.load %arg11[%c1_64, %c0_65, %c0_66] : memref<2x64x256xbf16, #tpu.memory_space<vmem>>, vector<1x64x256xbf16>
    %167 = vector.shape_cast %166 : vector<1x64x256xbf16> to vector<64x256xbf16>
    %cst_67 = arith.constant dense<0.000000e+00> : vector<16x256xf32>
    %168 = tpu.matmul %165, %167, %cst_67 {dimension_numbers = #tpu.dot_dimension_numbers<[1], [0], [0], [1], [0, 0, 1, 1], [], []>} : vector<16x64xbf16>, vector<64x256xbf16>, vector<16x256xf32> -> vector<16x256xf32>
    %169 = vector.extract_strided_slice %168 {offsets = [0, 0], sizes = [16, 128], strides = [1, 1]} : vector<16x256xf32> to vector<16x128xf32>
    %170 = vector.extract_strided_slice %168 {offsets = [0, 128], sizes = [16, 128], strides = [1, 1]} : vector<16x256xf32> to vector<16x128xf32>
    %171 = arith.negf %169 : vector<16x128xf32>
    %172 = math.exp %171 : vector<16x128xf32>
    %cst_68 = arith.constant 1.000000e+00 : f32
    %173 = vector.broadcast %cst_68 : f32 to vector<16x128xf32>
    %174 = arith.addf %173, %172 : vector<16x128xf32>
    %175 = arith.divf %173, %174 : vector<16x128xf32>
    %176 = arith.mulf %169, %175 : vector<16x128xf32>
    %177 = arith.mulf %176, %170 : vector<16x128xf32>
    %178 = arith.truncf %177 : vector<16x128xf32> to vector<16x128xbf16>
    %c1_69 = arith.constant 1 : index
    %c0_70 = arith.constant 0 : index
    %c0_71 = arith.constant 0 : index
    %179 = vector.load %arg12[%c1_69, %c0_70, %c0_71] : memref<2x128x64xbf16, #tpu.memory_space<vmem>>, vector<1x128x64xbf16>
    %180 = vector.shape_cast %179 : vector<1x128x64xbf16> to vector<128x64xbf16>
    %cst_72 = arith.constant dense<0.000000e+00> : vector<16x64xf32>
    %181 = tpu.matmul %178, %180, %cst_72 {dimension_numbers = #tpu.dot_dimension_numbers<[1], [0], [0], [1], [0, 0, 1, 1], [], []>} : vector<16x128xbf16>, vector<128x64xbf16>, vector<16x64xf32> -> vector<16x64xf32>
    %182 = arith.addf %150, %181 : vector<16x64xf32>
    %c0_73 = arith.constant 0 : index
    %c0_74 = arith.constant 0 : index
    %183 = vector.load %arg13[%c0_73, %c0_74] : memref<1x64xf32, #tpu.memory_space<vmem>>, vector<1x64xf32>
    %184 = arith.mulf %182, %182 : vector<16x64xf32>
    %cst_75 = arith.constant dense<0.000000e+00> : vector<16xf32>
    %185 = vector.multi_reduction <add>, %184, %cst_75 [1] : vector<16x64xf32> to vector<16xf32>
    %186 = vector.shape_cast %185 : vector<16xf32> to vector<16x1xf32>
    %cst_76 = arith.constant 6.400000e+01 : f32
    %187 = vector.broadcast %cst_76 : f32 to vector<16x1xf32>
    %188 = arith.divf %186, %187 : vector<16x1xf32>
    %cst_77 = arith.constant 9.99999974E-6 : f32
    %189 = vector.broadcast %cst_77 : f32 to vector<16x1xf32>
    %190 = arith.addf %188, %189 : vector<16x1xf32>
    %191 = math.rsqrt %190 : vector<16x1xf32>
    %192 = vector.broadcast %191 : vector<16x1xf32> to vector<16x64xf32>
    %193 = arith.mulf %182, %192 : vector<16x64xf32>
    %194 = vector.broadcast %183 : vector<1x64xf32> to vector<16x64xf32>
    %195 = arith.mulf %193, %194 : vector<16x64xf32>
    %196 = arith.truncf %195 : vector<16x64xf32> to vector<16x64xbf16>
    %c0_78 = arith.constant 0 : index
    %c0_79 = arith.constant 0 : index
    %197 = vector.load %arg14[%c0_78, %c0_79] : memref<64x256xbf16, #tpu.memory_space<vmem>>, vector<64x256xbf16>
    %cst_80 = arith.constant dense<0.000000e+00> : vector<16x256xf32>
    %198 = tpu.matmul %196, %197, %cst_80 {dimension_numbers = #tpu.dot_dimension_numbers<[1], [0], [0], [1], [0, 0, 1, 1], [], []>} : vector<16x64xbf16>, vector<64x256xbf16>, vector<16x256xf32> -> vector<16x256xf32>
    %199 = arith.truncf %198 : vector<16x256xf32> to vector<16x256xbf16>
    %c0_81 = arith.constant 0 : index
    %c0_82 = arith.constant 0 : index
    %200 = vector.load %arg15[%c0_81, %c0_82] : memref<16x256xbf16, #tpu.memory_space<vmem>>, vector<16x256xbf16>
    tpu.vector_store %arg15[%c0_81, %c0_82], %199 {strides = array<i32>} : memref<16x256xbf16, #tpu.memory_space<vmem>>, vector<16x256xbf16>,
    return
  }
  func.func @transform_0(%arg0: i32) -> (i32, i32) {
    %c0_i32 = arith.constant 0 : i32
    %c0_i32_0 = arith.constant 0 : i32
    %c0_i32_1 = arith.constant 0 : i32
    return %c0_i32, %c0_i32_0 : i32, i32
  }
  func.func @transform_1(%arg0: i32) -> (i32, i32) {
    %c0_i32 = arith.constant 0 : i32
    %c0_i32_0 = arith.constant 0 : i32
    %c0_i32_1 = arith.constant 0 : i32
    return %c0_i32, %c0_i32_0 : i32, i32
  }
  func.func @transform_2(%arg0: i32) -> (i32, i32) {
    %c0_i32 = arith.constant 0 : i32
    %c0_i32_0 = arith.constant 0 : i32
    %c0_i32_1 = arith.constant 0 : i32
    return %c0_i32, %c0_i32_0 : i32, i32
  }
  func.func @transform_3(%arg0: i32) -> (i32, i32) {
    %c0_i32 = arith.constant 0 : i32
    %c0_i32_0 = arith.constant 0 : i32
    %c0_i32_1 = arith.constant 0 : i32
    return %c0_i32, %c0_i32_0 : i32, i32
  }
  func.func @transform_4(%arg0: i32) -> (i32, i32) {
    %c0_i32 = arith.constant 0 : i32
    %c0_i32_0 = arith.constant 0 : i32
    %c0_i32_1 = arith.constant 0 : i32
    return %c0_i32, %c0_i32_0 : i32, i32
  }
  func.func @transform_5(%arg0: i32) -> (i32, i32) {
    %c0_i32 = arith.constant 0 : i32
    %c0_i32_0 = arith.constant 0 : i32
    %c0_i32_1 = arith.constant 0 : i32
    return %c0_i32, %c0_i32_0 : i32, i32
  }
  func.func @transform_6(%arg0: i32) -> (i32, i32, i32) {
    %c0_i32 = arith.constant 0 : i32
    %c0_i32_0 = arith.constant 0 : i32
    %c0_i32_1 = arith.constant 0 : i32
    %c0_i32_2 = arith.constant 0 : i32
    return %c0_i32, %c0_i32_0, %c0_i32_1 : i32, i32, i32
  }
  func.func @transform_7(%arg0: i32) -> (i32, i32, i32) {
    %c0_i32 = arith.constant 0 : i32
    %c0_i32_0 = arith.constant 0 : i32
    %c0_i32_1 = arith.constant 0 : i32
    %c0_i32_2 = arith.constant 0 : i32
    return %c0_i32, %c0_i32_0, %c0_i32_1 : i32, i32, i32
  }
  func.func @transform_8(%arg0: i32) -> (i32, i32, i32) {
    %c0_i32 = arith.constant 0 : i32
    %c0_i32_0 = arith.constant 0 : i32
    %c0_i32_1 = arith.constant 0 : i32
    %c0_i32_2 = arith.constant 0 : i32
    return %c0_i32, %c0_i32_0, %c0_i32_1 : i32, i32, i32
  }
  func.func @transform_9(%arg0: i32) -> (i32, i32, i32) {
    %c0_i32 = arith.constant 0 : i32
    %c0_i32_0 = arith.constant 0 : i32
    %c0_i32_1 = arith.constant 0 : i32
    %c0_i32_2 = arith.constant 0 : i32
    return %c0_i32, %c0_i32_0, %c0_i32_1 : i32, i32, i32
  }
  func.func @transform_10(%arg0: i32) -> (i32, i32, i32) {
    %c0_i32 = arith.constant 0 : i32
    %c0_i32_0 = arith.constant 0 : i32
    %c0_i32_1 = arith.constant 0 : i32
    %c0_i32_2 = arith.constant 0 : i32
    return %c0_i32, %c0_i32_0, %c0_i32_1 : i32, i32, i32
  }
  func.func @transform_11(%arg0: i32) -> (i32, i32, i32) {
    %c0_i32 = arith.constant 0 : i32
    %c0_i32_0 = arith.constant 0 : i32
    %c0_i32_1 = arith.constant 0 : i32
    %c0_i32_2 = arith.constant 0 : i32
    return %c0_i32, %c0_i32_0, %c0_i32_1 : i32, i32, i32
  }
  func.func @transform_12(%arg0: i32) -> (i32, i32) {
    %c0_i32 = arith.constant 0 : i32
    %c0_i32_0 = arith.constant 0 : i32
    %c0_i32_1 = arith.constant 0 : i32
    return %c0_i32, %c0_i32_0 : i32, i32
  }
  func.func @transform_13(%arg0: i32) -> (i32, i32) {
    %c0_i32 = arith.constant 0 : i32
    %c0_i32_0 = arith.constant 0 : i32
    %c0_i32_1 = arith.constant 0 : i32
    return %c0_i32, %c0_i32_0 : i32, i32
  }
  func.func @transform_14(%arg0: i32) -> (i32, i32) {
    %c0_i32 = arith.constant 0 : i32
    %c0_i32_0 = arith.constant 0 : i32
    %c0_i32_1 = arith.constant 0 : i32
    return %c0_i32, %c0_i32_0 : i32, i32
  }
}

</mosaic_0001>

<bundles_post_ra>
// kernel: tpu_custom_call.1
= control target key start
LH: loop header
LB: loop body
LE: loop exit
PB: predicated region body
PF: predicated region fallthrough
CT: control target
= control target key end

     0   :  { %19 = vsyncpa [#allocation3], 0  ;;  %s3515_s0 = inlined_call_operand.vmem [shape: bf16[16,64], index: 0, kind: input, shape index: {}]   ;;  %s3516_s1 = inlined_call_operand.vmem [shape: f32[16,128], index: 1, kind: input, shape index: {}]   ;;  %s3517_s2 = inlined_call_operand.hbm [shape: f32[16,128], index: 2, kind: input, shape index: {}]   ;;  %s3518_s3 = inlined_call_operand.hbm [shape: f32[16,64], index: 3, kind: input, shape index: {}]   ;;  %s3519_s4 = inlined_call_operand.hbm [shape: f32[64,128], index: 4, kind: input, shape index: {}]   ;;  %s3520_s5 = inlined_call_operand.hbm [shape: bf16[64,64], index: 5, kind: input, shape index: {}]   ;;  %s3521_s6 = inlined_call_operand.vmem [shape: f32[2,1,64], index: 6, kind: input, shape index: {}]   ;;  %s3522_s7 = inlined_call_operand.vmem [shape: bf16[2,64,640], index: 7, kind: input, shape index: {}]   ;;  %s3523_s8 = inlined_call_operand.vmem [shape: bf16[2,128,64], index: 8, kind: input, shape index: {}]   ;;  %s3524_s9 = inlined_call_operand.vmem [shape: f32[2,1,64], index: 9, kind: input, shape index: {}]   ;;  %s3525_s10 = inlined_call_operand.hbm [shape: bf16[2,64,256], index: 10, kind: input, shape index: {}]   ;;  %s3526_s11 = inlined_call_operand.vmem [shape: bf16[2,128,64], index: 11, kind: input, shape index: {}]   ;;  %s3527_s12 = inlined_call_operand.vmem [shape: f32[1,64], index: 12, kind: input, shape index: {}]   ;;  %s3528_s13 = inlined_call_operand.hbm [shape: bf16[64,256], index: 13, kind: input, shape index: {}]   ;;  %s3529_s14 = inlined_call_operand.hbm [shape: bf16[16,256], index: 14, kind: output, shape index: {}]  }
   0x1   :  { %20 = vsyncpa [#allocation6], 0 }
   0x2   :  { %21 = vsyncpa [#allocation9], 0 }
   0x3   :  { %22 = vsyncpa [#allocation12], 0 }
   0x4   :  { %23 = vsyncpa [#allocation4], 0  ;;  %s2765_s29 = smov [#allocation5]   ;;  %s2766_s15 = smov [#allocation8]  }
   0x5   :  { %s45_s30 = sshll.u32 %s2765_s29, 4  ;;  %s69_s16 = sshll.u32 %s2766_s15, 4  ;;  %s46_s30 = int_to_ptr.vmem [resolvable:$true] %s45_s30  ;;  %s2854_s16 = int_to_ptr.vmem [resolvable:$true] %s69_s16 }
   0x6   :  { %s2601_s19 = scalar_lea.hbm %s3518_s3, 256 }
   0x7   :  { %p2602_p0 = scmp.ne.s32.totalorder %s3518_s3, %s2601_s19  ;;  %p2605_p1 = scmp.lt.u32.totalorder %s2601_s19, %s3518_s3 }
   0x9   :  { %p2607_p2 = pnand %p2605_p1, %p2602_p0 }
   0xb   :  { %2610 = shalt.err (!%p2607_p2)
}
   0xc   :  { %s2611_s24 = scalar_lea.vmem %s46_s30, 256  ;;  %p2616_p4 = scmp.lt.s32.totalorder %s46_s30, %s46_s30 }
   0xd   :  { %p2612_p3 = scmp.ne.s32.totalorder %s46_s30, %s2611_s24  ;;  %p2617_p5 = scmp.lt.s32.totalorder %s2611_s24, %s2611_s24 }
   0xf   :  { %p2618_p6 = por %p2617_p5, %p2616_p4 }
  0x11   :  { %p2619_p7 = pnand %p2618_p6, %p2612_p3 }
  0x13   :  { %2622 = shalt.err (!%p2619_p7)
}
  0x14   :  { %s3530_s25 = smov 128   ;;  %s2768_s26 = smov 8  }
  0x15   :  { %51 = dma.hbm_to_vmem [thread:$0]  %s3518_s3, 256, %s46_s30, [#allocation6], %s3530_s25, %s3530_s25, %s2768_s26  }
  0x16   :  { %s2623_s17 = scalar_lea.hbm %s3520_s5, 512 }
  0x17   :  { %p2624_p8 = scmp.ne.s32.totalorder %s3520_s5, %s2623_s17  ;;  %p2627_p9 = scmp.lt.u32.totalorder %s2623_s17, %s3520_s5 }
  0x19   :  { %p2629_p10 = pnand %p2627_p9, %p2624_p8 }
  0x1b   :  { %2632 = shalt.err (!%p2629_p10)
}
  0x1c   :  { %s2633_s22 = scalar_lea.vmem %s2854_s16, 512  ;;  %p2638_p12 = scmp.lt.s32.totalorder %s2854_s16, %s2854_s16 }
  0x1d   :  { %p2634_p11 = scmp.ne.s32.totalorder %s2854_s16, %s2633_s22  ;;  %p2639_p13 = scmp.lt.s32.totalorder %s2633_s22, %s2633_s22 }
  0x1f   :  { %p2640_p0 = por %p2639_p13, %p2638_p12 }
  0x21   :  { %p2641_p1 = pnand %p2640_p0, %p2634_p11 }
  0x23   :  { %2644 = shalt.err (!%p2641_p1)
}
  0x24   :  { %s2769_s3 = smov 64   ;;  %s2770_s30 = smov 4  }
  0x25   :  { %75 = dma.hbm_to_vmem [thread:$0]  %s3520_s5, 512, %s2854_s16, [#allocation9], %s2769_s3, %s2769_s3, %s2770_s30  }
  0x26   :  { %s2771_s27 = smov [#allocation2]   ;;  %s2772_s29 = smov [#allocation7]  }
  0x27   :  { %s33_s28 = sshll.u32 %s2771_s27, 4  ;;  %s57_s15 = sshll.u32 %s2772_s29, 4  ;;  %s34_s28 = int_to_ptr.vmem [resolvable:$true] %s33_s28  ;;  %s2888_s15 = int_to_ptr.vmem [resolvable:$true] %s57_s15 }
  0x28   :  { %s2645_s19 = scalar_lea.hbm %s3517_s2, 256 }
  0x29   :  { %p2646_p2 = scmp.ne.s32.totalorder %s3517_s2, %s2645_s19  ;;  %p2649_p3 = scmp.lt.u32.totalorder %s2645_s19, %s3517_s2 }
  0x2b   :  { %p2651_p4 = pnand %p2649_p3, %p2646_p2 }
  0x2d   :  { %2654 = shalt.err (!%p2651_p4)
}
  0x2e   :  { %s2655_s5 = scalar_lea.vmem %s34_s28, 256  ;;  %p2660_p6 = scmp.lt.s32.totalorder %s34_s28, %s34_s28 }
  0x2f   :  { %p2656_p5 = scmp.ne.s32.totalorder %s34_s28, %s2655_s5  ;;  %p2661_p7 = scmp.lt.s32.totalorder %s2655_s5, %s2655_s5 }
  0x31   :  { %p2662_p8 = por %p2661_p7, %p2660_p6 }
  0x33   :  { %p2663_p9 = pnand %p2662_p8, %p2656_p5 }
  0x35   :  { %2666 = shalt.err (!%p2663_p9)
}
  0x36   :  { %s3532_s16 = smov 128   ;;  %s2667_s25 = scalar_lea.hbm %s3519_s4, 1024 }
  0x37   :  { %39 = dma.hbm_to_vmem [thread:$0]  %s3517_s2, 256, %s34_s28, [#allocation3], %s3532_s16, %s3532_s16, %s2768_s26  }
  0x38   :  { %p2668_p10 = scmp.ne.s32.totalorder %s3519_s4, %s2667_s25  ;;  %p2671_p11 = scmp.lt.u32.totalorder %s2667_s25, %s3519_s4 }
  0x3a   :  { %p2673_p12 = pnand %p2671_p11, %p2668_p10 }
  0x3c   :  { %2676 = shalt.err (!%p2673_p12)
}
  0x3d   :  { %s2677_s19 = scalar_lea.vmem %s2888_s15, 1024  ;;  %p2682_p0 = scmp.lt.s32.totalorder %s2888_s15, %s2888_s15 }
  0x3e   :  { %p2678_p13 = scmp.ne.s32.totalorder %s2888_s15, %s2677_s19  ;;  %p2683_p1 = scmp.lt.s32.totalorder %s2677_s19, %s2677_s19 }
  0x40   :  { %p2684_p2 = por %p2683_p1, %p2682_p0 }
  0x42   :  { %p2685_p3 = pnand %p2684_p2, %p2678_p13 }
  0x44   :  { %2688 = shalt.err (!%p2685_p3)
}
  0x45   :  { %63 = dma.hbm_to_vmem [thread:$0]  %s3519_s4, 1024, %s2888_s15, [#allocation6], %s3532_s16, %s3532_s16, %s2768_s26  }
  0x46   :  { %s2773_s20 = smov [#allocation10]   ;;  %s2774_s22 = smov [#allocation11]  }
  0x47   :  { %s89_s21 = sshll.u32 %s2773_s20, 4  ;;  %s105_s5 = sshll.u32 %s2774_s22, 4  ;;  %s90_s21 = int_to_ptr.vmem [resolvable:$true] %s89_s21  ;;  %s2925_s5 = int_to_ptr.vmem [resolvable:$true] %s105_s5 }
  0x48   :  { %s2689_s23 = scalar_lea.hbm %s3525_s10, 2048 }
  0x49   :  { %p2690_p4 = scmp.ne.s32.totalorder %s3525_s10, %s2689_s23  ;;  %p2693_p5 = scmp.lt.u32.totalorder %s2689_s23, %s3525_s10 }
  0x4b   :  { %p2695_p6 = pnand %p2693_p5, %p2690_p4 }
  0x4d   :  { %2698 = shalt.err (!%p2695_p6)
}
  0x4e   :  { %s2699_s4 = scalar_lea.vmem %s90_s21, 2048  ;;  %p2704_p8 = scmp.lt.s32.totalorder %s90_s21, %s90_s21 }
  0x4f   :  { %p2700_p7 = scmp.ne.s32.totalorder %s90_s21, %s2699_s4  ;;  %p2705_p9 = scmp.lt.s32.totalorder %s2699_s4, %s2699_s4 }
  0x51   :  { %p2706_p10 = por %p2705_p9, %p2704_p8 }
  0x53   :  { %p2707_p11 = pnand %p2706_p10, %p2700_p7 }
  0x55   :  { %2710 = shalt.err (!%p2707_p11)
}
  0x56   :  { %95 = dma.hbm_to_vmem [thread:$0]  %s3525_s10, 2048, %s90_s21, [#allocation9], %s3532_s16, %s3532_s16, %s2768_s26  }
  0x57   :  { %s2711_s2 = scalar_lea.hbm %s3528_s13, 1024 }
  0x58   :  { %p2712_p12 = scmp.ne.s32.totalorder %s3528_s13, %s2711_s2  ;;  %p2715_p13 = scmp.lt.u32.totalorder %s2711_s2, %s3528_s13 }
  0x5a   :  { %p2717_p0 = pnand %p2715_p13, %p2712_p12 }
  0x5c   :  { %2720 = shalt.err (!%p2717_p0)
}
  0x5d   :  { %s2721_s30 = scalar_lea.vmem %s2925_s5, 1024  ;;  %p2726_p2 = scmp.lt.s32.totalorder %s2925_s5, %s2925_s5 }
  0x5e   :  { %p2722_p1 = scmp.ne.s32.totalorder %s2925_s5, %s2721_s30  ;;  %p2727_p3 = scmp.lt.s32.totalorder %s2721_s30, %s2721_s30 }
  0x60   :  { %p2728_p4 = por %p2727_p3, %p2726_p2 }
  0x62   :  { %p2729_p5 = pnand %p2728_p4, %p2722_p1 }
  0x64   :  { %2732 = shalt.err (!%p2729_p5)
}
  0x65   :  { %111 = dma.hbm_to_vmem [thread:$0]  %s3528_s13, 1024, %s2925_s5, [#allocation12], %s3532_s16, %s3532_s16, %s2768_s26  }
  0x66   :  { %2755 = dma.done.wait [#allocation3], 256  }
  0x67   :  { %2756 = vsyncadd [#allocation3], 4294967040 }
  0x68   :  { %2757 = dma.done.wait [#allocation6], 1280  }
  0x69   :  { %2758 = vsyncadd [#allocation6], 4294966016 }
  0x6a   :  { %2759 = dma.done.wait [#allocation9], 2560  }
  0x6b   :  { %2760 = vsyncadd [#allocation9], 4294964736 }
  0x6c   :  { %2761 = dma.done.wait [#allocation12], 1024  }
  0x6d   :  { %2762 = vsyncadd [#allocation12], 4294966272  ;;  %v2152_v0 = vld [vmem:[%s3515_s0] sm:$0xff]   ;;  %vm160_vm0 = vcmask 523264   ;;  %v2426_v10 = vld [vmem:[%s3522_s7 + $0x8] ss:$20 sps:$4 sm:$0xff]  }
  0x6e   :  { %v2965_v1 = vunpack.c.l.bf16 %v2152_v0  ;;  %v2967_v2 = vunpack.c.h.bf16 %v2152_v0  ;;  %v2421_v7 = vld [vmem:[%s3522_s7 + $0x4] ss:$20 sps:$4 sm:$0xff]   ;;  %v2423_v8 = vld [vmem:[%s3522_s7] ss:$20 sps:$4 sm:$0xff]   ;;  %v2429_v12 = vld [vmem:[%s3522_s7 + $0x28] ss:$20 sps:$4 sm:$0xff]  }
  0x6f   :  { %v2424_v9 = vld [vmem:[%s3522_s7 + $0xc] ss:$20 sps:$4 sm:$0xff]   ;;  %316 = vmatprep.subr.bf16.mxu0 %v2421_v7  ;;  %v2430_v13 = vld [vmem:[%s3522_s7 + $0x34] ss:$20 sps:$4 sm:$0xff]   ;;  %v2432_v14 = vld [vmem:[%s3522_s7 + $0x30] ss:$20 sps:$4 sm:$0xff]  }
  0x70   :  { %v158_v3 = vmul.f32 %v2965_v1, %v2965_v1  ;;  %v159_v4 = vmul.f32 %v2967_v2, %v2967_v2  ;;  %v2427_v11 = vld [vmem:[%s3522_s7 + $0x2c] ss:$20 sps:$4 sm:$0xff]   ;;  %317 = vmatpush1.bf16.msra.mxu0 %v2423_v8  ;;  %359 = vmatprep.subr.bf16.mxu1 %v2424_v9  ;;  %v2433_v15 = vld [vmem:[%s3522_s7 + $0x54] ss:$20 sps:$4 sm:$0xff]   ;;  %v2435_v16 = vld [vmem:[%s3522_s7 + $0x50] ss:$20 sps:$4 sm:$0xff]  }
  0x71   :  { %360 = vmatpush1.bf16.msra.mxu1 %v2426_v10  ;;  %318 = vmatprep.subr.bf16.mxu0 %v2427_v11  ;;  %v2436_v17 = vld [vmem:[%s3522_s7 + $0x5c] ss:$20 sps:$4 sm:$0xff]   ;;  %v2438_v18 = vld [vmem:[%s3522_s7 + $0x58] ss:$20 sps:$4 sm:$0xff]   ;;  %v2775_v21 = vmov 0   ;;  %v2776_v24 = vmov 0.0  }
  0x72   :  { %v161_v5 = vsel %vm160_vm0, %v158_v3, 0.0  ;;  %v164_v6 = vsel %vm160_vm0, %v159_v4, 0.0  ;;  %361 = vmatprep.subr.bf16.mxu1 %v2430_v13  ;;  %v2439_v19 = vld [vmem:[%s3522_s7 + $0x7c] ss:$20 sps:$4 sm:$0xff]   ;;  %v2442_v20 = vld [vmem:[%s3522_s7 + $0x84] ss:$20 sps:$4 sm:$0xff]   ;;  %348 = vmatprep.mubr.bf16.mxu0 %v2775_v21 }
  0x73   :  { %162 = vadd.xlane.f32.xlu0 %v161_v5  ;;  %v2441_v22 = vld [vmem:[%s3522_s7 + $0x78] ss:$20 sps:$4 sm:$0xff]   ;;  %391 = vmatprep.mubr.bf16.mxu1 %v2775_v21  ;;  %v2444_v23 = vld [vmem:[%s3522_s7 + $0x80] ss:$20 sps:$4 sm:$0xff]   ;;  %v2445_v38 = vld [vmem:[%s3522_s7 + $0x10] ss:$20 sps:$4 sm:$0xff]  }
  0x74   :  { %319 = vmatpush1.bf16.msra.mxu0 %v2429_v12  ;;  %v1967_v34 = vld [vmem:[%s3521_s6] ss:$0 sm:$0xff]  ;;  %v2446_v40 = vld [vmem:[%s3522_s7 + $0x38] ss:$20 sps:$4 sm:$0xff]   ;;  %vm2777_vm1 = vmmov 0   ;;  %v3064_v45 = vld [vmem:[#allocation7 + $0x10] sm:$0xff] }
  0x75   :  { %362 = vmatpush1.bf16.msra.mxu1 %v2432_v14  ;;  %320 = vmatprep.subr.bf16.mxu0 %v2433_v15  ;;  %v2447_v41 = vld [vmem:[%s3522_s7 + $0x60] ss:$20 sps:$4 sm:$0xff]   ;;  %v2448_v42 = vld [vmem:[%s3522_s7 + $0x88] ss:$20 sps:$4 sm:$0xff]   ;;  %s2778_s24 = smov [#allocation13]  }
  0x76   :  { %363 = vmatprep.subr.bf16.mxu1 %v2436_v17  ;;  %v3060_v43 = vld [vmem:[%s3516_s1] sm:$0xff]  ;;  %v3073_v48 = vld [vmem:[%s3516_s1 + $0x8] sm:$0xff]  ;;  %v3077_v52 = vld [vmem:[#allocation7 + $0x18] sm:$0xff]  ;;  %s1952_s13 = sshll.u32 %s2778_s24, 4  ;;  %s1953_s13 = int_to_ptr.vmem [resolvable:$true] %s1952_s13 }
  0x77   :  { %165 = vadd.xlane.f32.xlu0 %v164_v6  ;;  %v3062_v44 = vld [vmem:[#allocation7] sm:$0xff]  ;;  %v3075_v51 = vld [vmem:[#allocation7 + $0x8] sm:$0xff]  ;;  %v3082_v55 = vld [vmem:[#allocation7 + $0x30] sm:$0xff]  ;;  %s2733_s5 = scalar_lea.vmem %s1953_s13, 256  ;;  %p2738_p7 = scmp.lt.s32.totalorder %s1953_s13, %s1953_s13 }
  0x78   :  { %321 = vmatpush1.bf16.msra.mxu0 %v2435_v16  ;;  %v3066_v46 = vld [vmem:[#allocation7 + $0x20] sm:$0xff]  ;;  %v3079_v53 = vld [vmem:[#allocation7 + $0x28] sm:$0xff]  ;;  %v3084_v58 = vld [vmem:[#allocation7 + $0x38] sm:$0xff]  ;;  %p2734_p6 = scmp.ne.s32.totalorder %s1953_s13, %s2733_s5  ;;  %p2739_p8 = scmp.lt.s32.totalorder %s2733_s5, %s2733_s5 }
  0x79   :  { %364 = vmatpush1.bf16.msra.mxu1 %v2438_v18  ;;  %322 = vmatprep.subr.bf16.mxu0 %v2439_v19  ;;  %v3068_v47 = vld [vmem:[#allocation2] sm:$0xff]  ;;  %v3086_v59 = vld [vmem:[#allocation2 + $0x8] sm:$0xff] }
  0x7a   :  { %365 = vmatprep.subr.bf16.mxu1 %v2442_v20  ;;  %p2740_p9 = por %p2739_p8, %p2738_p7 }
  0x7c   :  { %323 = vmatpush1.bf16.msra.mxu0 %v2441_v22  ;;  %p2741_p10 = pnand %p2740_p9, %p2734_p6 }
  0x7d   :  { %366 = vmatpush1.bf16.msra.mxu1 %v2444_v23  ;;  %2231 = vmatprep.subr.bf16.mxu0 %v2776_v24 }
  0x7e   :  { %2243 = vmatprep.subr.bf16.mxu1 %v2776_v24 }
 0x100   :  { %v163_v25 = vpop.xlane.xlu0 %162 }
 0x101   :  { %v168_v26 = vmul.f32 0.015625, %v163_v25 }
 0x103   :  { %v170_v27 = vadd.f32 1e-05, %v168_v26 }
 0x104   :  { %v166_v28 = vpop.xlane.xlu0 %165 }
 0x105   :  { %2549 = vrsqrt.f32 %v170_v27  ;;  %v169_v29 = vmul.f32 0.015625, %v166_v28 }
 0x107   :  { %v171_v30 = vadd.f32 1e-05, %v169_v29 }
 0x109   :  { %2551 = vrsqrt.f32 %v171_v30 }
 0x10f   :  { %v2550_v31 = vpop.eup %2549 }
 0x110   :  { %v174_v32 = vmul.f32 %v2550_v31, %v2965_v1 }
 0x112   :  { %v182_v36 = vmul.f32 %v1967_v34, %v174_v32 }
 0x113   :  { %v2552_v33 = vpop.eup %2551 }
 0x114   :  { %v175_v35 = vmul.f32 %v2552_v33, %v2967_v2 }
 0x116   :  { %v183_v37 = vmul.f32 %v1967_v34, %v175_v35 }
 0x118   :  { %v184_v39 = vpack.c.bf16 %v183_v37, %v182_v36 }
 0x11a   :  { %1988 = vmatmul.mubr.msk.bf16.vlgmr.msra.gmra.mrb[0].mxu0 %vm160_vm0, %v184_v39  ;;  %1989 = vmatmul.mubr.msk.bf16.vlgmr.msra.gmra.mrb[0].mxu1 %vm160_vm0, %v184_v39 }
 0x11b   :  { %2232 = vmatpush3.bf16.msra.mxu0 %v2445_v38  ;;  %2239 = vmatprep.mubr.msk.bf16.mxu0 %vm2777_vm1, %v2776_v24 }
 0x11c   :  { %2233 = vmatprep.subr.bf16.mxu0 %v2776_v24  ;;  %2251 = vmatprep.mubr.msk.bf16.mxu1 %vm2777_vm1, %v2776_v24 }
 0x11f   :  { %2234 = vmatpush3.bf16.msra.mxu0 %v2446_v40 }
 0x120   :  { %2235 = vmatprep.subr.bf16.mxu0 %v2776_v24 }
 0x123   :  { %2236 = vmatpush3.bf16.msra.mxu0 %v2447_v41 }
 0x124   :  { %2237 = vmatprep.subr.bf16.mxu0 %v2776_v24 }
 0x127   :  { %2238 = vmatpush3.bf16.msra.mxu0 %v2448_v42 }
 0x128   :  { %2255 = vmatprep.subr.bf16.mxu0 %v2776_v24 }
 0x12a   :  { %2240 = vmatmul.mubr.msk.bf16.vlgmr.msra.gmra.mrb[4].mxu0 %vm160_vm0, %v184_v39 }
 0x12b   :  { %2263 = vmatprep.mubr.msk.bf16.mxu0 %vm2777_vm1, %v2776_v24 }
 0x1ed   :  { %v350_v49 = vpop.f32.mrb[0].mxu0  ;;  %v393_v50 = vpop.f32.mrb[0].mxu1 }
 0x1ee   :  { %v443_v54 = vmul.f32 %v350_v49, %v3060_v43  ;;  %v352_v56 = vpop.f32.mrb[1].mxu0  ;;  %v395_v57 = vpop.f32.mrb[1].mxu1  ;;  %v3089_v60 = vmul.f32 %v393_v50, %v3062_v44  ;;  %v3092_v61 = vmul.f32 %v393_v50, %v3064_v45  ;;  %v3095_v62 = vmul.f32 %v393_v50, %v3066_v46 }
 0x1ef   :  { %v445_v63 = vmul.f32 %v395_v57, %v3068_v47  ;;  %v354_v0 = vpop.f32.mrb[2].mxu0  ;;  %v397_v3 = vpop.f32.mrb[2].mxu1  ;;  %v3109_v10 = vmul.f32 %v393_v50, %v3082_v55  ;;  %v449_v22 = vmul.f32 %v352_v56, %v3060_v43  ;;  %v3141_v50 = vld [vmem:[#allocation8] sm:$0xff]   ;;  %v3148_v56 = vld [vmem:[#allocation8 + $0x10] sm:$0xff]   ;;  %v3152_v57 = vld [vmem:[#allocation8 + $0x18] sm:$0xff]  }
 0x1f0   :  { %v444_v4 = vmul.f32 %v354_v0, %v3073_v48  ;;  %v3100_v5 = vmul.f32 %v397_v3, %v3075_v51  ;;  %v3103_v6 = vmul.f32 %v397_v3, %v3077_v52  ;;  %v3106_v7 = vmul.f32 %v397_v3, %v3079_v53  ;;  %v356_v8 = vpop.f32.mrb[3].mxu0  ;;  %v399_v9 = vpop.f32.mrb[3].mxu1  ;;  %2256 = vmatpush3.bf16.msra.mxu0 %v3141_v50 }
 0x1f1   :  { %v447_v11 = vadd.f32 %v445_v63, %v443_v54  ;;  %v3112_v12 = vmul.f32 %v397_v3, %v3084_v58  ;;  %v446_v13 = vmul.f32 %v399_v9, %v3086_v59  ;;  %v450_v27 = vmul.f32 %v356_v8, %v3073_v48  ;;  %2257 = vmatprep.subr.bf16.mxu0 %v2776_v24  ;;  %v3145_v54 = vld [vmem:[#allocation8 + $0x8] sm:$0xff]   ;;  %v3157_v63 = vld [vmem:[#allocation5] sm:$0xff]  ;;  %v3159_v3 = vld [vmem:[#allocation5 + $0x8] sm:$0xff] }
 0x1f2   :  { %v475_v14 = vpack.c.bf16 %v3100_v5, %v3089_v60  ;;  %v476_v15 = vpack.c.bf16 %v3103_v6, %v3092_v61  ;;  %v477_v16 = vpack.c.bf16 %v3106_v7, %v3095_v62  ;;  %v2453_v60 = vld [vmem:[%s3523_s8] sm:$0xff]   ;;  %v2454_v61 = vld [vmem:[%s3523_s8 + $0x8] sm:$0xff]   ;;  %v2455_v62 = vld [vmem:[%s3523_s8 + $0x10] sm:$0xff]  }
 0x1f3   :  { %v448_v17 = vadd.f32 %v446_v13, %v444_v4  ;;  %v478_v18 = vpack.c.bf16 %v3112_v12, %v3109_v10  ;;  %v2456_v5 = vld [vmem:[%s3523_s8 + $0x18] sm:$0xff]   ;;  %v2457_v6 = vld [vmem:[%s3523_s8 + $0x20] sm:$0xff]   ;;  %v2458_v7 = vld [vmem:[%s3523_s8 + $0x28] sm:$0xff]  }
 0x1f4   :  { %2258 = vmatpush3.bf16.msra.mxu0 %v3145_v54  ;;  %v2459_v10 = vld [vmem:[%s3523_s8 + $0x30] sm:$0xff]  }
 0x1f5   :  { %v479_v19 = vpack.c.bf16 %v448_v17, %v447_v11  ;;  %2259 = vmatprep.subr.bf16.mxu0 %v2776_v24 }
 0x1f8   :  { %2260 = vmatpush3.bf16.msra.mxu0 %v3148_v56 }
 0x1f9   :  { %2261 = vmatprep.subr.bf16.mxu0 %v2776_v24 }
 0x1fc   :  { %2262 = vmatpush3.bf16.msra.mxu0 %v3152_v57 }
 0x1fd   :  { %v436_v20 = vpop.f32.mrb[4].mxu0  ;;  %2267 = vmatprep.subr.bf16.mxu0 %v2776_v24 }
 0x1fe   :  { %v451_v23 = vmul.f32 %v436_v20, %v3068_v47  ;;  %v2241_v25 = vpop.f32.mrb[5].mxu0 }
 0x1ff   :  { %v439_v26 = vpop.f32.mrb[6].mxu0 }
 0x200   :  { %v453_v28 = vadd.f32 %v451_v23, %v449_v22  ;;  %v452_v29 = vmul.f32 %v439_v26, %v3086_v59  ;;  %v2242_v30 = vpop.f32.mrb[7].mxu0 }
 0x202   :  { %v454_v31 = vadd.f32 %v452_v29, %v450_v27  ;;  %v455_v32 = vmul.f32 %v453_v28, %v3062_v44  ;;  %v457_v33 = vmul.f32 %v453_v28, %v3064_v45  ;;  %v459_v34 = vmul.f32 %v453_v28, %v3066_v46  ;;  %v2460_v29 = vld [vmem:[%s3523_s8 + $0x38] sm:$0xff]  }
 0x203   :  { %v461_v35 = vmul.f32 %v453_v28, %v3082_v55 }
 0x204   :  { %v456_v36 = vmul.f32 %v454_v31, %v3075_v51  ;;  %v458_v37 = vmul.f32 %v454_v31, %v3077_v52  ;;  %v460_v38 = vmul.f32 %v454_v31, %v3079_v53  ;;  %v462_v39 = vmul.f32 %v454_v31, %v3084_v58 }
 0x206   :  { %v463_v40 = vpack.c.bf16 %v456_v36, %v455_v32  ;;  %v464_v41 = vpack.c.bf16 %v458_v37, %v457_v33  ;;  %v465_v42 = vpack.c.bf16 %v460_v38, %v459_v34  ;;  %v466_v49 = vpack.c.bf16 %v462_v39, %v461_v35 }
 0x208   :  { %2244 = vmatpush3.bf16.xpose.msra.mxu1 %v463_v40 }
 0x209   :  { %2245 = vmatprep.subr.bf16.mxu1 %v2776_v24 }
 0x210   :  { %2246 = vmatpush3.bf16.xpose.msra.mxu1 %v464_v41 }
 0x211   :  { %2247 = vmatprep.subr.bf16.mxu1 %v2776_v24 }
 0x218   :  { %2248 = vmatpush3.bf16.xpose.msra.mxu1 %v465_v42 }
 0x219   :  { %2249 = vmatprep.subr.bf16.mxu1 %v2776_v24 }
 0x220   :  { %2250 = vmatpush3.bf16.xpose.msra.mxu1 %v466_v49 }
 0x221   :  { %2279 = vmatprep.subr.bf16.mxu1 %v2776_v24 }
 0x227   :  { %2252 = vmatmul.mubr.bf16.vlgmr.msra.gmra.mrb[4].mxu1 %v479_v19 }
 0x228   :  { %2295 = vmatprep.mubr.msk.bf16.mxu1 %vm2777_vm1, %v2776_v24  ;;  %2280 = vmatpush3.bf16.msra.mxu1 %v2453_v60 }
 0x229   :  { %2281 = vmatprep.subr.bf16.mxu1 %v2776_v24 }
 0x22c   :  { %2282 = vmatpush3.bf16.msra.mxu1 %v2454_v61 }
 0x22d   :  { %2283 = vmatprep.subr.bf16.mxu1 %v2776_v24 }
 0x230   :  { %2284 = vmatpush3.bf16.msra.mxu1 %v2455_v62 }
 0x231   :  { %2285 = vmatprep.subr.bf16.mxu1 %v2776_v24 }
 0x234   :  { %2286 = vmatpush3.bf16.msra.mxu1 %v2456_v5 }
 0x235   :  { %2287 = vmatprep.subr.bf16.mxu1 %v2776_v24 }
 0x238   :  { %2288 = vmatpush3.bf16.msra.mxu1 %v2457_v6 }
 0x239   :  { %2289 = vmatprep.subr.bf16.mxu1 %v2776_v24 }
 0x23c   :  { %2290 = vmatpush3.bf16.msra.mxu1 %v2458_v7  ;;  %v2005_v7 = vld [vmem:[%s3524_s9] ss:$0 sm:$0xff] }
 0x23d   :  { %2291 = vmatprep.subr.bf16.mxu1 %v2776_v24 }
 0x240   :  { %2292 = vmatpush3.bf16.msra.mxu1 %v2459_v10 }
 0x241   :  { %2293 = vmatprep.subr.bf16.mxu1 %v2776_v24 }
 0x244   :  { %2294 = vmatpush3.bf16.msra.mxu1 %v2460_v29  ;;  %v2479_v29 = vld [vmem:[%s3526_s11 + $0x30] sm:$0xff]  }
 0x2fa   :  { %v514_v0 = vpop.f32.mrb[4].mxu1 }
 0x2fb   :  { %v515_v4 = vadd.f32 %v514_v0, %v3157_v63  ;;  %v2253_v8 = vpop.f32.mrb[5].mxu1 }
 0x2fc   :  { %v517_v9 = vpop.f32.mrb[6].mxu1  ;;  %v2466_v8 = vld [vmem:[#allocation10 + $0x14] ss:$8 sps:$4 sm:$0xff]  }
 0x2fd   :  { %v521_v11 = vmul.f32 1.442695, %v515_v4  ;;  %v518_v13 = vadd.f32 %v517_v9, %v3159_v3  ;;  %v2254_v17 = vpop.f32.mrb[7].mxu1  ;;  %v2461_v4 = vld [vmem:[#allocation10] ss:$8 sps:$4 sm:$0xff]  }
 0x2fe   :  { %v2469_v9 = vld [vmem:[#allocation10 + $0x24] ss:$8 sps:$4 sm:$0xff]   ;;  %v2472_v17 = vld [vmem:[#allocation10 + $0x34] ss:$8 sps:$4 sm:$0xff]  }
 0x2ff   :  { %v523_v19 = vmul.f32 1.442695, %v518_v13  ;;  %2553 = vpow2.f32 %v521_v11  ;;  %v2467_v11 = vld [vmem:[#allocation10 + $0x20] ss:$8 sps:$4 sm:$0xff]   ;;  %v2470_v13 = vld [vmem:[#allocation10 + $0x30] ss:$8 sps:$4 sm:$0xff]  }
 0x301   :  { %2555 = vpow2.f32 %v523_v19 }
 0x309   :  { %v2554_v20 = vpop.eup %2553 }
 0x30b   :  { %v2556_v22 = vpop.eup %2555 }
 0x30c   :  { %v525_v23 = vpack.c.bf16 %v2556_v22, %v2554_v20 }
 0x30e   :  { %2264 = vmatmul.mubr.msk.bf16.vlgmr.msra.gmra.mrb[8].mxu0 %vm160_vm0, %v525_v23 }
 0x30f   :  { %2268 = vmatpush3.bf16.msra.mxu0 %v475_v14  ;;  %2275 = vmatprep.mubr.msk.bf16.mxu0 %vm2777_vm1, %v2776_v24 }
 0x310   :  { %2269 = vmatprep.subr.bf16.mxu0 %v2776_v24 }
 0x313   :  { %2270 = vmatpush3.bf16.msra.mxu0 %v476_v15 }
 0x314   :  { %2271 = vmatprep.subr.bf16.mxu0 %v2776_v24 }
 0x317   :  { %2272 = vmatpush3.bf16.msra.mxu0 %v477_v16 }
 0x318   :  { %2273 = vmatprep.subr.bf16.mxu0 %v2776_v24 }
 0x31b   :  { %2274 = vmatpush3.bf16.msra.mxu0 %v478_v18 }
 0x3e1   :  { %v587_v12 = vpop.f32.mrb[8].mxu0 }
 0x3e2   :  { %2557 = vrcp.f32 %v587_v12  ;;  %v2265_v14 = vpop.f32.mrb[9].mxu0 }
 0x3e3   :  { %v590_v15 = vpop.f32.mrb[10].mxu0 }
 0x3e4   :  { %2559 = vrcp.f32 %v590_v15  ;;  %v2266_v16 = vpop.f32.mrb[11].mxu0 }
 0x3e5   :  { %v2473_v16 = vld [vmem:[%s3526_s11] sm:$0xff]  }
 0x3ec   :  { %v2558_v18 = vpop.eup %2557 }
 0x3ed   :  { %v596_v26 = vmul.f32 %v2558_v18, %v2554_v20  ;;  %v2474_v18 = vld [vmem:[%s3526_s11 + $0x8] sm:$0xff]  }
 0x3ee   :  { %v2560_v25 = vpop.eup %2559 }
 0x3ef   :  { %v597_v27 = vmul.f32 %v2560_v25, %v2556_v22  ;;  %v2475_v25 = vld [vmem:[%s3526_s11 + $0x10] sm:$0xff]  }
 0x3f1   :  { %v598_v28 = vpack.c.bf16 %v597_v27, %v596_v26  ;;  %v2476_v26 = vld [vmem:[%s3526_s11 + $0x18] sm:$0xff]   ;;  %v2477_v27 = vld [vmem:[%s3526_s11 + $0x20] sm:$0xff]  }
 0x3f3   :  { %2276 = vmatmul.mubr.msk.bf16.vlgmr.msra.gmra.mrb[12].mxu0 %vm160_vm0, %v598_v28  ;;  %v2478_v28 = vld [vmem:[%s3526_s11 + $0x28] sm:$0xff]  }
 0x3f4   :  { %860 = vmatprep.mubr.bf16.mxu0 %v2775_v21 }
 0x4c6   :  { %v636_v30 = vpop.f32.mrb[12].mxu0 }
 0x4c7   :  { %v2277_v31 = vpop.f32.mrb[13].mxu0 }
 0x4c8   :  { %v639_v32 = vpop.f32.mrb[14].mxu0 }
 0x4c9   :  { %v643_v33 = vpack.c.bf16 %v639_v32, %v636_v30  ;;  %v2278_v34 = vpop.f32.mrb[15].mxu0  ;;  %v2480_v30 = vld [vmem:[%s3526_s11 + $0x38] sm:$0xff]  }
 0x4cb   :  { %2296 = vmatmul.mubr.bf16.vlgmr.msra.gmra.mrb[8].mxu1 %v643_v33 }
 0x4cc   :  { %1186 = vmatprep.mubr.bf16.mxu1 %v2775_v21 }
 0x59e   :  { %v742_v35 = vpop.f32.mrb[8].mxu1 }
 0x59f   :  { %v3216_v36 = vadd.f32 %v2965_v1, %v742_v35  ;;  %v2297_v37 = vpop.f32.mrb[9].mxu1  ;;  %v2463_v1 = vld [vmem:[#allocation10 + $0x4] ss:$8 sps:$4 sm:$0xff]  }
 0x5a0   :  { %v745_v38 = vpop.f32.mrb[10].mxu1  ;;  %828 = vmatprep.subr.bf16.mxu0 %v2463_v1 }
 0x5a1   :  { %v3219_v39 = vadd.f32 %v2967_v2, %v745_v38  ;;  %v2298_v40 = vpop.f32.mrb[11].mxu1  ;;  %v752_v41 = vmul.f32 %v3216_v36, %v3216_v36  ;;  %829 = vmatpush1.bf16.msra.mxu0 %v2461_v4  ;;  %v2464_v2 = vld [vmem:[#allocation10 + $0x10] ss:$8 sps:$4 sm:$0xff]  }
 0x5a2   :  { %830 = vmatprep.subr.bf16.mxu0 %v2466_v8 }
 0x5a3   :  { %v754_v42 = vsel %vm160_vm0, %v752_v41, 0.0  ;;  %v753_v49 = vmul.f32 %v3219_v39, %v3219_v39 }
 0x5a4   :  { %755 = vadd.xlane.f32.xlu1 %v754_v42 }
 0x5a5   :  { %v757_v0 = vsel %vm160_vm0, %v753_v49, 0.0  ;;  %831 = vmatpush1.bf16.msra.mxu0 %v2464_v2 }
 0x5a6   :  { %832 = vmatprep.subr.bf16.mxu0 %v2469_v9 }
 0x5a8   :  { %758 = vadd.xlane.f32.xlu1 %v757_v0 }
 0x5a9   :  { %833 = vmatpush1.bf16.msra.mxu0 %v2467_v11 }
 0x5aa   :  { %834 = vmatprep.subr.bf16.mxu0 %v2472_v17 }
 0x5ad   :  { %835 = vmatpush1.bf16.msra.mxu0 %v2470_v13 }
 0x5ae   :  { %2299 = vmatprep.subr.bf16.mxu0 %v2776_v24 }
 0x631   :  { %v756_v19 = vpop.xlane.xlu1 %755 }
 0x632   :  { %v760_v20 = vmul.f32 0.015625, %v756_v19 }
 0x634   :  { %v762_v22 = vadd.f32 1e-05, %v760_v20 }
 0x635   :  { %v759_v23 = vpop.xlane.xlu1 %758 }
 0x636   :  { %2561 = vrsqrt.f32 %v762_v22  ;;  %v761_v60 = vmul.f32 0.015625, %v759_v23 }
 0x638   :  { %v763_v61 = vadd.f32 1e-05, %v761_v60 }
 0x63a   :  { %2563 = vrsqrt.f32 %v763_v61 }
 0x640   :  { %v2562_v62 = vpop.eup %2561 }
 0x641   :  { %v766_v5 = vmul.f32 %v2562_v62, %v3216_v36 }
 0x643   :  { %v774_v12 = vmul.f32 %v2005_v7, %v766_v5  ;;  %v2484_v5 = vld [vmem:[%s3522_s7 + $0xb0] ss:$20 sps:$4 sm:$0xff]  }
 0x644   :  { %v2564_v6 = vpop.eup %2563 }
 0x645   :  { %v767_v10 = vmul.f32 %v2564_v6, %v3219_v39  ;;  %v2487_v6 = vld [vmem:[%s3522_s7 + $0xcc] ss:$20 sps:$4 sm:$0xff]  }
 0x647   :  { %v775_v14 = vmul.f32 %v2005_v7, %v767_v10  ;;  %v2485_v7 = vld [vmem:[%s3522_s7 + $0xc8] ss:$20 sps:$4 sm:$0xff]   ;;  %v2488_v10 = vld [vmem:[%s3522_s7 + $0xd8] ss:$20 sps:$4 sm:$0xff]  }
 0x649   :  { %v776_v15 = vpack.c.bf16 %v775_v14, %v774_v12  ;;  %v2491_v12 = vld [vmem:[%s3522_s7 + $0xf4] ss:$20 sps:$4 sm:$0xff]   ;;  %v2489_v14 = vld [vmem:[%s3522_s7 + $0xf0] ss:$20 sps:$4 sm:$0xff]  }
 0x64b   :  { %2014 = vmatmul.mubr.msk.bf16.vlgmr.msra.gmra.mrb[16].mxu0 %vm160_vm0, %v776_v15  ;;  %v2492_v15 = vld [vmem:[%s3522_s7 + $0x100] ss:$20 sps:$4 sm:$0xff]  }
 0x64c   :  { %2315 = vmatprep.mubr.msk.bf16.mxu0 %vm2777_vm1, %v2776_v24  ;;  %2300 = vmatpush3.bf16.msra.mxu0 %v2473_v16  ;;  %v2493_v16 = vld [vmem:[%s3522_s7 + $0x118] ss:$20 sps:$4 sm:$0xff]  }
 0x64d   :  { %2301 = vmatprep.subr.bf16.mxu0 %v2776_v24 }
 0x650   :  { %2302 = vmatpush3.bf16.msra.mxu0 %v2474_v18  ;;  %v2495_v18 = vld [vmem:[%s3522_s7 + $0x11c] ss:$20 sps:$4 sm:$0xff]  }
 0x651   :  { %2303 = vmatprep.subr.bf16.mxu0 %v2776_v24 }
 0x654   :  { %2304 = vmatpush3.bf16.msra.mxu0 %v2475_v25  ;;  %v2496_v25 = vld [vmem:[%s3522_s7 + $0x128] ss:$20 sps:$4 sm:$0xff]  }
 0x655   :  { %2305 = vmatprep.subr.bf16.mxu0 %v2776_v24 }
 0x658   :  { %2306 = vmatpush3.bf16.msra.mxu0 %v2476_v26  ;;  %v2499_v26 = vld [vmem:[%s3522_s7 + $0xac] ss:$20 sps:$4 sm:$0xff]  }
 0x659   :  { %2307 = vmatprep.subr.bf16.mxu0 %v2776_v24 }
 0x65c   :  { %2308 = vmatpush3.bf16.msra.mxu0 %v2477_v27 }
 0x65d   :  { %2309 = vmatprep.subr.bf16.mxu0 %v2776_v24 }
 0x660   :  { %2310 = vmatpush3.bf16.msra.mxu0 %v2478_v28 }
 0x661   :  { %2311 = vmatprep.subr.bf16.mxu0 %v2776_v24 }
 0x664   :  { %2312 = vmatpush3.bf16.msra.mxu0 %v2479_v29 }
 0x665   :  { %2313 = vmatprep.subr.bf16.mxu0 %v2776_v24 }
 0x668   :  { %2314 = vmatpush3.bf16.msra.mxu0 %v2480_v30 }
 0x669   :  { %2319 = vmatprep.subr.bf16.mxu0 %v2776_v24 }
 0x71e   :  { %v862_v31 = vpop.f32.mrb[16].mxu0 }
 0x71f   :  { %v2015_v32 = vmul.f32 -1.442695, %v862_v31  ;;  %v864_v33 = vpop.f32.mrb[17].mxu0 }
 0x720   :  { %v866_v34 = vpop.f32.mrb[18].mxu0 }
 0x721   :  { %2565 = vpow2.f32 %v2015_v32  ;;  %v2016_v35 = vmul.f32 -1.442695, %v866_v34  ;;  %v868_v37 = vpop.f32.mrb[19].mxu0 }
 0x723   :  { %2567 = vpow2.f32 %v2016_v35 }
 0x72b   :  { %v2566_v38 = vpop.eup %2565 }
 0x72c   :  { %v877_v40 = vadd.f32 1.0, %v2566_v38 }
 0x72d   :  { %v2568_v41 = vpop.eup %2567 }
 0x72e   :  { %2569 = vrcp.f32 %v877_v40  ;;  %v878_v42 = vadd.f32 1.0, %v2568_v41 }
 0x730   :  { %2571 = vrcp.f32 %v878_v42  ;;  %v2497_v42 = vld [vmem:[%s3522_s7 + $0xa8] ss:$20 sps:$4 sm:$0xff]  }
 0x738   :  { %v2570_v49 = vpop.eup %2569 }
 0x739   :  { %v883_v0 = vmul.f32 %v2570_v49, %v862_v31 }
 0x73a   :  { %v2572_v1 = vpop.eup %2571 }
 0x73b   :  { %v885_v4 = vmul.f32 %v883_v0, %v864_v33  ;;  %v884_v8 = vmul.f32 %v2572_v1, %v866_v34  ;;  %v2502_v0 = vld [vmem:[%s3522_s7 + $0xd4] ss:$20 sps:$4 sm:$0xff]   ;;  %v2500_v1 = vld [vmem:[%s3522_s7 + $0xd0] ss:$20 sps:$4 sm:$0xff]  }
 0x73d   :  { %v886_v2 = vmul.f32 %v884_v8, %v868_v37  ;;  %v2026_v37 = vld [vmem:[%s3521_s6 + $0x1] ss:$0 sm:$0xff]  ;;  %v2503_v8 = vld [vmem:[%s3522_s7 + $0xf8] ss:$20 sps:$4 sm:$0xff]  }
 0x73f   :  { %v887_v9 = vpack.c.bf16 %v886_v2, %v885_v4  ;;  %v2505_v4 = vld [vmem:[%s3522_s7 + $0xfc] ss:$20 sps:$4 sm:$0xff]   ;;  %v2508_v2 = vld [vmem:[%s3522_s7 + $0x124] ss:$20 sps:$4 sm:$0xff]  }
 0x741   :  { %2316 = vmatmul.mubr.bf16.vlgmr.msra.gmra.mrb[20].mxu0 %v887_v9 }
 0x742   :  { %2327 = vmatprep.mubr.msk.bf16.mxu0 %vm2777_vm1, %v2776_v24  ;;  %2320 = vmatpush3.bf16.msra.mxu0 %v2484_v5 }
 0x743   :  { %2321 = vmatprep.subr.bf16.mxu0 %v2776_v24 }
 0x746   :  { %2322 = vmatpush3.bf16.msra.mxu0 %v2488_v10 }
 0x747   :  { %2323 = vmatprep.subr.bf16.mxu0 %v2776_v24 }
 0x74a   :  { %2324 = vmatpush3.bf16.msra.mxu0 %v2492_v15 }
 0x74b   :  { %2325 = vmatprep.subr.bf16.mxu0 %v2776_v24 }
 0x74e   :  { %2326 = vmatpush3.bf16.msra.mxu0 %v2496_v25 }
 0x74f   :  { %2343 = vmatprep.subr.bf16.mxu0 %v2776_v24 }
 0x814   :  { %v986_v11 = vpop.f32.mrb[20].mxu0 }
 0x815   :  { %v3271_v13 = vadd.f32 %v986_v11, %v3216_v36  ;;  %v2317_v17 = vpop.f32.mrb[21].mxu0  ;;  %v2483_v36 = vld [vmem:[%s3522_s7 + $0xa4] ss:$20 sps:$4 sm:$0xff]  }
 0x816   :  { %v989_v19 = vpop.f32.mrb[22].mxu0  ;;  %1154 = vmatprep.subr.bf16.mxu1 %v2483_v36 }
 0x817   :  { %v3274_v20 = vadd.f32 %v989_v19, %v3219_v39  ;;  %v2318_v22 = vpop.f32.mrb[23].mxu0  ;;  %v997_v23 = vmul.f32 %v3271_v13, %v3271_v13  ;;  %v2481_v39 = vld [vmem:[%s3522_s7 + $0xa0] ss:$20 sps:$4 sm:$0xff]  }
 0x818   :  { %1155 = vmatpush1.bf16.msra.mxu1 %v2481_v39 }
 0x819   :  { %v999_v60 = vsel %vm160_vm0, %v997_v23, 0.0  ;;  %v998_v61 = vmul.f32 %v3274_v20, %v3274_v20  ;;  %1156 = vmatprep.subr.bf16.mxu1 %v2487_v6 }
 0x81a   :  { %1000 = vadd.xlane.f32.xlu0 %v999_v60 }
 0x81b   :  { %v1002_v62 = vsel %vm160_vm0, %v998_v61, 0.0 }
 0x81c   :  { %1003 = vadd.xlane.f32.xlu1 %v1002_v62  ;;  %1157 = vmatpush1.bf16.msra.mxu1 %v2485_v7 }
 0x81d   :  { %1158 = vmatprep.subr.bf16.mxu1 %v2491_v12 }
 0x820   :  { %1159 = vmatpush1.bf16.msra.mxu1 %v2489_v14 }
 0x821   :  { %1160 = vmatprep.subr.bf16.mxu1 %v2495_v18 }
 0x824   :  { %1161 = vmatpush1.bf16.msra.mxu1 %v2493_v16 }
 0x825   :  { %1197 = vmatprep.subr.bf16.mxu1 %v2499_v26 }
 0x8a7   :  { %v1001_v27 = vpop.xlane.xlu0 %1000 }
 0x8a8   :  { %v1005_v28 = vmul.f32 0.015625, %v1001_v27 }
 0x8a9   :  { %v1004_v29 = vpop.xlane.xlu1 %1003 }
 0x8aa   :  { %v1007_v30 = vadd.f32 1e-05, %v1005_v28  ;;  %v1006_v31 = vmul.f32 0.015625, %v1004_v29 }
 0x8ac   :  { %2573 = vrsqrt.f32 %v1007_v30  ;;  %v1008_v32 = vadd.f32 1e-05, %v1006_v31 }
 0x8ae   :  { %2575 = vrsqrt.f32 %v1008_v32 }
 0x8b6   :  { %v2574_v33 = vpop.eup %2573 }
 0x8b7   :  { %v1011_v34 = vmul.f32 %v2574_v33, %v3271_v13 }
 0x8b8   :  { %v2576_v35 = vpop.eup %2575 }
 0x8b9   :  { %v1012_v38 = vmul.f32 %v2576_v35, %v3274_v20  ;;  %v1019_v40 = vmul.f32 %v2026_v37, %v1011_v34 }
 0x8bb   :  { %v1020_v41 = vmul.f32 %v2026_v37, %v1012_v38 }
 0x8bd   :  { %v1021_v49 = vpack.c.bf16 %v1020_v41, %v1019_v40 }
 0x8bf   :  { %2071 = vmatmul.mubr.msk.bf16.vlgmr.msra.gmra.mrb[12].mxu1 %vm160_vm0, %v1021_v49  ;;  %2328 = vmatmul.mubr.msk.bf16.vlgmr.msra.gmra.mrb[24].mxu0 %vm160_vm0, %v1021_v49 }
 0x8c0   :  { %1198 = vmatpush1.bf16.msra.mxu1 %v2497_v42  ;;  %1229 = vmatprep.mubr.bf16.mxu1 %v2775_v21 }
 0x8c1   :  { %1199 = vmatprep.subr.bf16.mxu1 %v2502_v0  ;;  %2344 = vmatpush3.bf16.msra.mxu0 %v3141_v50  ;;  %v2506_v50 = vld [vmem:[%s3522_s7 + $0x120] ss:$20 sps:$4 sm:$0xff]  }
 0x8c2   :  { %2345 = vmatprep.subr.bf16.mxu0 %v2776_v24  ;;  %2351 = vmatprep.mubr.msk.bf16.mxu0 %vm2777_vm1, %v2776_v24 }
 0x8c4   :  { %1200 = vmatpush1.bf16.msra.mxu1 %v2500_v1 }
 0x8c5   :  { %1201 = vmatprep.subr.bf16.mxu1 %v2505_v4  ;;  %2346 = vmatpush3.bf16.msra.mxu0 %v3145_v54 }
 0x8c6   :  { %2347 = vmatprep.subr.bf16.mxu0 %v2776_v24 }
 0x8c8   :  { %1202 = vmatpush1.bf16.msra.mxu1 %v2503_v8 }
 0x8c9   :  { %1203 = vmatprep.subr.bf16.mxu1 %v2508_v2  ;;  %2348 = vmatpush3.bf16.msra.mxu0 %v3148_v56 }
 0x8ca   :  { %2349 = vmatprep.subr.bf16.mxu0 %v2776_v24 }
 0x8cc   :  { %1204 = vmatpush1.bf16.msra.mxu1 %v2506_v50 }
 0x8cd   :  { %2331 = vmatprep.subr.bf16.mxu1 %v2776_v24  ;;  %2350 = vmatpush3.bf16.msra.mxu0 %v3152_v57 }
 0x8ce   :  { %2355 = vmatprep.subr.bf16.mxu0 %v2776_v24 }
 0x8cf   :  { %2072 = vmatmul.mubr.msk.bf16.vlgmr.msra.gmra.mrb[16].mxu1 %vm160_vm0, %v1021_v49 }
 0x8d0   :  { %2339 = vmatprep.mubr.msk.bf16.mxu1 %vm2777_vm1, %v2776_v24 }
 0x992   :  { %v1188_v54 = vpop.f32.mrb[12].mxu1  ;;  %v1274_v9 = vpop.f32.mrb[24].mxu0 }
 0x993   :  { %v1289_v11 = vmul.f32 %v1274_v9, %v3068_v47  ;;  %v1190_v17 = vpop.f32.mrb[13].mxu1  ;;  %v2329_v56 = vpop.f32.mrb[25].mxu0  ;;  %v1281_v29 = vmul.f32 %v1188_v54, %v3060_v43 }
 0x994   :  { %v1287_v19 = vmul.f32 %v1190_v17, %v3060_v43  ;;  %v1192_v22 = vpop.f32.mrb[14].mxu1  ;;  %v1277_v23 = vpop.f32.mrb[26].mxu0  ;;  %v2512_v17 = vld [vmem:[%s3523_s8 + $0x58] sm:$0xff]   ;;  %v2513_v56 = vld [vmem:[%s3523_s8 + $0x60] sm:$0xff]  }
 0x995   :  { %v1290_v60 = vmul.f32 %v1277_v23, %v3086_v59  ;;  %v1194_v57 = vpop.f32.mrb[15].mxu1  ;;  %v2330_v61 = vpop.f32.mrb[27].mxu0 }
 0x996   :  { %v1291_v62 = vadd.f32 %v1289_v11, %v1287_v19  ;;  %v1288_v36 = vmul.f32 %v1194_v57, %v3073_v48  ;;  %v2511_v11 = vld [vmem:[%s3523_s8 + $0x50] sm:$0xff]   ;;  %v2514_v19 = vld [vmem:[%s3523_s8 + $0x68] sm:$0xff]  }
 0x998   :  { %v1292_v39 = vadd.f32 %v1290_v60, %v1288_v36  ;;  %v1293_v5 = vmul.f32 %v1291_v62, %v3062_v44  ;;  %v1295_v6 = vmul.f32 %v1291_v62, %v3064_v45  ;;  %v1297_v7 = vmul.f32 %v1291_v62, %v3066_v46 }
 0x999   :  { %v1299_v10 = vmul.f32 %v1291_v62, %v3082_v55 }
 0x99a   :  { %v1294_v12 = vmul.f32 %v1292_v39, %v3075_v51  ;;  %v1296_v14 = vmul.f32 %v1292_v39, %v3077_v52  ;;  %v1298_v15 = vmul.f32 %v1292_v39, %v3079_v53  ;;  %v1300_v16 = vmul.f32 %v1292_v39, %v3084_v58 }
 0x99c   :  { %v1301_v18 = vpack.c.bf16 %v1294_v12, %v1293_v5  ;;  %v1302_v25 = vpack.c.bf16 %v1296_v14, %v1295_v6  ;;  %v1303_v26 = vpack.c.bf16 %v1298_v15, %v1297_v7  ;;  %v1304_v27 = vpack.c.bf16 %v1300_v16, %v1299_v10  ;;  %v2516_v7 = vld [vmem:[%s3523_s8 + $0x78] sm:$0xff]  }
 0x99e   :  { %2332 = vmatpush3.bf16.xpose.msra.mxu1 %v1301_v18 }
 0x99f   :  { %2333 = vmatprep.subr.bf16.mxu1 %v2776_v24 }
 0x9a2   :  { %v1231_v28 = vpop.f32.mrb[16].mxu1 }
 0x9a3   :  { %v1305_v30 = vmul.f32 %v1231_v28, %v3062_v44  ;;  %v1233_v31 = vpop.f32.mrb[17].mxu1  ;;  %v1307_v32 = vmul.f32 %v1231_v28, %v3064_v45  ;;  %v1309_v33 = vmul.f32 %v1231_v28, %v3066_v46  ;;  %v1311_v34 = vmul.f32 %v1231_v28, %v3082_v55 }
 0x9a4   :  { %v1283_v35 = vmul.f32 %v1233_v31, %v3068_v47  ;;  %v1235_v37 = vpop.f32.mrb[18].mxu1  ;;  %v1282_v44 = vmul.f32 %v1192_v22, %v3073_v48  ;;  %v2515_v22 = vld [vmem:[%s3523_s8 + $0x70] sm:$0xff]  }
 0x9a5   :  { %v1306_v38 = vmul.f32 %v1235_v37, %v3075_v51  ;;  %v1308_v40 = vmul.f32 %v1235_v37, %v3077_v52  ;;  %v1310_v41 = vmul.f32 %v1235_v37, %v3079_v53  ;;  %v1312_v43 = vmul.f32 %v1235_v37, %v3084_v58  ;;  %v1237_v42 = vpop.f32.mrb[19].mxu1  ;;  %v2523_v37 = vld [vmem:[#allocation10 + $0x60] ss:$8 sps:$4 sm:$0xff]  }
 0x9a6   :  { %v1285_v49 = vadd.f32 %v1283_v35, %v1281_v29  ;;  %v1284_v45 = vmul.f32 %v1237_v42, %v3086_v59  ;;  %2334 = vmatpush3.bf16.xpose.msra.mxu1 %v1302_v25  ;;  %v2525_v35 = vld [vmem:[#allocation10 + $0x64] ss:$8 sps:$4 sm:$0xff]  }
 0x9a7   :  { %2335 = vmatprep.subr.bf16.mxu1 %v2776_v24  ;;  %v1313_v46 = vpack.c.bf16 %v1306_v38, %v1305_v30  ;;  %v1314_v47 = vpack.c.bf16 %v1308_v40, %v1307_v32  ;;  %v1315_v55 = vpack.c.bf16 %v1310_v41, %v1309_v33  ;;  %v1316_v0 = vpack.c.bf16 %v1312_v43, %v1311_v34  ;;  %v2517_v33 = vld [vmem:[#allocation10 + $0x40] ss:$8 sps:$4 sm:$0xff]   ;;  %v2522_v34 = vld [vmem:[#allocation10 + $0x54] ss:$8 sps:$4 sm:$0xff]   ;;  %v2526_v38 = vld [vmem:[#allocation10 + $0x70] ss:$8 sps:$4 sm:$0xff]  }
 0x9a8   :  { %v1286_v51 = vadd.f32 %v1284_v45, %v1282_v44  ;;  %v2528_v40 = vld [vmem:[#allocation10 + $0x74] ss:$8 sps:$4 sm:$0xff]  }
 0x9aa   :  { %v1317_v1 = vpack.c.bf16 %v1286_v51, %v1285_v49 }
 0x9ae   :  { %2336 = vmatpush3.bf16.xpose.msra.mxu1 %v1303_v26 }
 0x9af   :  { %2337 = vmatprep.subr.bf16.mxu1 %v2776_v24 }
 0x9b6   :  { %2338 = vmatpush3.bf16.xpose.msra.mxu1 %v1304_v27 }
 0x9b7   :  { %2367 = vmatprep.subr.bf16.mxu1 %v2776_v24 }
 0x9bd   :  { %2340 = vmatmul.mubr.bf16.vlgmr.msra.gmra.mrb[20].mxu1 %v1317_v1 }
 0x9be   :  { %2383 = vmatprep.mubr.msk.bf16.mxu1 %vm2777_vm1, %v2776_v24 }
 0xa90   :  { %v1352_v48 = vpop.f32.mrb[20].mxu1 }
 0xa91   :  { %v1353_v52 = vadd.f32 %v1352_v48, %v3157_v63  ;;  %v2341_v53 = vpop.f32.mrb[21].mxu1  ;;  %v2509_v63 = vld [vmem:[%s3523_s8 + $0x40] sm:$0xff]  }
 0xa92   :  { %v1355_v58 = vpop.f32.mrb[22].mxu1  ;;  %2368 = vmatpush3.bf16.msra.mxu1 %v2509_v63  ;;  %v2529_v53 = vld [vmem:[%s3526_s11 + $0x40] sm:$0xff]  }
 0xa93   :  { %v1359_v59 = vmul.f32 1.442695, %v1353_v52  ;;  %v1356_v4 = vadd.f32 %v1355_v58, %v3159_v3  ;;  %v2342_v8 = vpop.f32.mrb[23].mxu1  ;;  %v2510_v3 = vld [vmem:[%s3523_s8 + $0x48] sm:$0xff]   ;;  %2369 = vmatprep.subr.bf16.mxu1 %v2776_v24 }
 0xa94   :  { %v2530_v58 = vld [vmem:[%s3526_s11 + $0x48] sm:$0xff]   ;;  %v2533_v8 = vld [vmem:[%s3526_s11 + $0x60] sm:$0xff]  }
 0xa95   :  { %v1361_v2 = vmul.f32 1.442695, %v1356_v4  ;;  %2577 = vpow2.f32 %v1359_v59  ;;  %v2531_v59 = vld [vmem:[%s3526_s11 + $0x50] sm:$0xff]   ;;  %v2532_v4 = vld [vmem:[%s3526_s11 + $0x58] sm:$0xff]  }
 0xa96   :  { %2370 = vmatpush3.bf16.msra.mxu1 %v2510_v3 }
 0xa97   :  { %2579 = vpow2.f32 %v1361_v2  ;;  %2371 = vmatprep.subr.bf16.mxu1 %v2776_v24  ;;  %v2534_v2 = vld [vmem:[%s3526_s11 + $0x68] sm:$0xff]  }
 0xa9a   :  { %2372 = vmatpush3.bf16.msra.mxu1 %v2511_v11 }
 0xa9b   :  { %2373 = vmatprep.subr.bf16.mxu1 %v2776_v24 }
 0xa9e   :  { %2374 = vmatpush3.bf16.msra.mxu1 %v2512_v17 }
 0xa9f   :  { %v2578_v50 = vpop.eup %2577  ;;  %2375 = vmatprep.subr.bf16.mxu1 %v2776_v24 }
 0xaa1   :  { %v2580_v54 = vpop.eup %2579 }
 0xaa2   :  { %v1363_v9 = vpack.c.bf16 %v2580_v54, %v2578_v50  ;;  %2376 = vmatpush3.bf16.msra.mxu1 %v2513_v56 }
 0xaa3   :  { %2377 = vmatprep.subr.bf16.mxu1 %v2776_v24 }
 0xaa4   :  { %2352 = vmatmul.mubr.msk.bf16.vlgmr.msra.gmra.mrb[28].mxu0 %vm160_vm0, %v1363_v9 }
 0xaa5   :  { %2356 = vmatpush3.bf16.msra.mxu0 %v1313_v46  ;;  %2363 = vmatprep.mubr.msk.bf16.mxu0 %vm2777_vm1, %v2776_v24 }
 0xaa6   :  { %2357 = vmatprep.subr.bf16.mxu0 %v2776_v24  ;;  %2378 = vmatpush3.bf16.msra.mxu1 %v2514_v19 }
 0xaa7   :  { %2379 = vmatprep.subr.bf16.mxu1 %v2776_v24 }
 0xaa9   :  { %2358 = vmatpush3.bf16.msra.mxu0 %v1314_v47 }
 0xaaa   :  { %2359 = vmatprep.subr.bf16.mxu0 %v2776_v24  ;;  %2380 = vmatpush3.bf16.msra.mxu1 %v2515_v22 }
 0xaab   :  { %2381 = vmatprep.subr.bf16.mxu1 %v2776_v24 }
 0xaad   :  { %2360 = vmatpush3.bf16.msra.mxu0 %v1315_v55 }
 0xaae   :  { %2361 = vmatprep.subr.bf16.mxu0 %v2776_v24  ;;  %2382 = vmatpush3.bf16.msra.mxu1 %v2516_v7 }
 0xab1   :  { %2362 = vmatpush3.bf16.msra.mxu0 %v1316_v0  ;;  %v2101_v0 = vld [vmem:[%s3524_s9 + $0x1] ss:$0 sm:$0xff] }
 0xb77   :  { %v1401_v23 = vpop.f32.mrb[28].mxu0 }
 0xb78   :  { %2581 = vrcp.f32 %v1401_v23  ;;  %v2353_v60 = vpop.f32.mrb[29].mxu0 }
 0xb79   :  { %v1404_v57 = vpop.f32.mrb[30].mxu0 }
 0xb7a   :  { %2583 = vrcp.f32 %v1404_v57  ;;  %v2354_v61 = vpop.f32.mrb[31].mxu0 }
 0xb82   :  { %v2582_v62 = vpop.eup %2581 }
 0xb83   :  { %v1410_v39 = vmul.f32 %v2582_v62, %v2578_v50  ;;  %v2535_v50 = vld [vmem:[%s3526_s11 + $0x70] sm:$0xff]  }
 0xb84   :  { %v2584_v36 = vpop.eup %2583 }
 0xb85   :  { %v1411_v5 = vmul.f32 %v2584_v36, %v2580_v54  ;;  %v2536_v54 = vld [vmem:[%s3526_s11 + $0x78] sm:$0xff]  }
 0xb87   :  { %v1412_v6 = vpack.c.bf16 %v1411_v5, %v1410_v39 }
 0xb89   :  { %2364 = vmatmul.mubr.msk.bf16.vlgmr.msra.gmra.mrb[32].mxu0 %vm160_vm0, %v1412_v6 }
 0xb8a   :  { %1677 = vmatprep.mubr.bf16.mxu0 %v2775_v21 }
 0xc5c   :  { %v1450_v10 = vpop.f32.mrb[32].mxu0 }
 0xc5d   :  { %v2365_v12 = vpop.f32.mrb[33].mxu0 }
 0xc5e   :  { %v1453_v14 = vpop.f32.mrb[34].mxu0 }
 0xc5f   :  { %v1457_v15 = vpack.c.bf16 %v1453_v14, %v1450_v10  ;;  %v2366_v16 = vpop.f32.mrb[35].mxu0 }
 0xc61   :  { %2384 = vmatmul.mubr.bf16.vlgmr.msra.gmra.mrb[24].mxu1 %v1457_v15 }
 0xc62   :  { %1922 = vmatprep.mubr.bf16.mxu1 %v2775_v21 }
 0xd34   :  { %v1557_v18 = vpop.f32.mrb[24].mxu1 }
 0xd35   :  { %v3441_v25 = vadd.f32 %v1557_v18, %v3271_v13  ;;  %v2385_v26 = vpop.f32.mrb[25].mxu1  ;;  %v2519_v13 = vld [vmem:[#allocation10 + $0x44] ss:$8 sps:$4 sm:$0xff]  }
 0xd36   :  { %v1560_v27 = vpop.f32.mrb[26].mxu1  ;;  %1645 = vmatprep.subr.bf16.mxu0 %v2519_v13  ;;  %v2546_v13 = vld [vmem:[#allocation11 + $0x30] ss:$8 sps:$4 sm:$0xff]  }
 0xd37   :  { %v3444_v28 = vadd.f32 %v1560_v27, %v3274_v20  ;;  %v2386_v29 = vpop.f32.mrb[27].mxu1  ;;  %v1568_v30 = vmul.f32 %v3441_v25, %v3441_v25  ;;  %1646 = vmatpush1.bf16.msra.mxu0 %v2517_v33  ;;  %v2520_v20 = vld [vmem:[#allocation10 + $0x50] ss:$8 sps:$4 sm:$0xff]  }
 0xd38   :  { %1647 = vmatprep.subr.bf16.mxu0 %v2522_v34  ;;  %v2539_v29 = vld [vmem:[#allocation11 + $0x4] ss:$8 sps:$4 sm:$0xff]  }
 0xd39   :  { %v1570_v31 = vsel %vm160_vm0, %v1568_v30, 0.0  ;;  %v1569_v32 = vmul.f32 %v3444_v28, %v3444_v28  ;;  %v2537_v30 = vld [vmem:[#allocation11] ss:$8 sps:$4 sm:$0xff]   ;;  %1890 = vmatprep.subr.bf16.mxu1 %v2539_v29 }
 0xd3a   :  { %1571 = vadd.xlane.f32.xlu0 %v1570_v31  ;;  %1891 = vmatpush1.bf16.msra.mxu1 %v2537_v30  ;;  %v2542_v31 = vld [vmem:[#allocation11 + $0x14] ss:$8 sps:$4 sm:$0xff]  }
 0xd3b   :  { %v1573_v21 = vsel %vm160_vm0, %v1569_v32, 0.0  ;;  %1648 = vmatpush1.bf16.msra.mxu0 %v2520_v20  ;;  %v2540_v32 = vld [vmem:[#allocation11 + $0x10] ss:$8 sps:$4 sm:$0xff]   ;;  %1892 = vmatprep.subr.bf16.mxu1 %v2542_v31 }
 0xd3c   :  { %1574 = vadd.xlane.f32.xlu1 %v1573_v21  ;;  %1649 = vmatprep.subr.bf16.mxu0 %v2525_v35  ;;  %v2543_v21 = vld [vmem:[#allocation11 + $0x20] ss:$8 sps:$4 sm:$0xff]  }
 0xd3e   :  { %1893 = vmatpush1.bf16.msra.mxu1 %v2540_v32 }
 0xd3f   :  { %1650 = vmatpush1.bf16.msra.mxu0 %v2523_v37 }
 0xd40   :  { %1651 = vmatprep.subr.bf16.mxu0 %v2528_v40 }
 0xd43   :  { %1652 = vmatpush1.bf16.msra.mxu0 %v2526_v38 }
 0xd44   :  { %2387 = vmatprep.subr.bf16.mxu0 %v2776_v24 }
 0xdc7   :  { %v1572_v41 = vpop.xlane.xlu0 %1571 }
 0xdc8   :  { %v1576_v43 = vmul.f32 0.015625, %v1572_v41 }
 0xdc9   :  { %v1575_v42 = vpop.xlane.xlu1 %1574 }
 0xdca   :  { %v1578_v44 = vadd.f32 1e-05, %v1576_v43  ;;  %v1577_v49 = vmul.f32 0.015625, %v1575_v42  ;;  %v2137_v42 = vld [vmem:[%s3527_s12] ss:$0 sm:$0xff] }
 0xdcc   :  { %2585 = vrsqrt.f32 %v1578_v44  ;;  %v1579_v45 = vadd.f32 1e-05, %v1577_v49 }
 0xdce   :  { %2587 = vrsqrt.f32 %v1579_v45 }
 0xdd6   :  { %v2586_v46 = vpop.eup %2585 }
 0xdd7   :  { %v1582_v47 = vmul.f32 %v2586_v46, %v3441_v25 }
 0xdd8   :  { %v2588_v55 = vpop.eup %2587 }
 0xdd9   :  { %v1583_v51 = vmul.f32 %v2588_v55, %v3444_v28  ;;  %v1590_v1 = vmul.f32 %v2101_v0, %v1582_v47 }
 0xddb   :  { %v1591_v48 = vmul.f32 %v2101_v0, %v1583_v51 }
 0xddd   :  { %v1592_v52 = vpack.c.bf16 %v1591_v48, %v1590_v1 }
 0xddf   :  { %2110 = vmatmul.mubr.msk.bf16.vlgmr.msra.gmra.mrb[36].mxu0 %vm160_vm0, %v1592_v52 }
 0xde0   :  { %2403 = vmatprep.mubr.msk.bf16.mxu0 %vm2777_vm1, %v2776_v24  ;;  %2388 = vmatpush3.bf16.msra.mxu0 %v2529_v53 }
 0xde1   :  { %2389 = vmatprep.subr.bf16.mxu0 %v2776_v24 }
 0xde4   :  { %2390 = vmatpush3.bf16.msra.mxu0 %v2530_v58 }
 0xde5   :  { %2391 = vmatprep.subr.bf16.mxu0 %v2776_v24 }
 0xde8   :  { %2392 = vmatpush3.bf16.msra.mxu0 %v2531_v59 }
 0xde9   :  { %2393 = vmatprep.subr.bf16.mxu0 %v2776_v24 }
 0xdec   :  { %2394 = vmatpush3.bf16.msra.mxu0 %v2532_v4 }
 0xded   :  { %2395 = vmatprep.subr.bf16.mxu0 %v2776_v24 }
 0xdf0   :  { %2396 = vmatpush3.bf16.msra.mxu0 %v2533_v8 }
 0xdf1   :  { %2397 = vmatprep.subr.bf16.mxu0 %v2776_v24 }
 0xdf4   :  { %2398 = vmatpush3.bf16.msra.mxu0 %v2534_v2 }
 0xdf5   :  { %2399 = vmatprep.subr.bf16.mxu0 %v2776_v24 }
 0xdf8   :  { %2400 = vmatpush3.bf16.msra.mxu0 %v2535_v50 }
 0xdf9   :  { %2401 = vmatprep.subr.bf16.mxu0 %v2776_v24 }
 0xdfc   :  { %2402 = vmatpush3.bf16.msra.mxu0 %v2536_v54 }
 0xeb2   :  { %v1679_v9 = vpop.f32.mrb[36].mxu0 }
 0xeb3   :  { %v2111_v63 = vmul.f32 -1.442695, %v1679_v9  ;;  %v1681_v3 = vpop.f32.mrb[37].mxu0 }
 0xeb4   :  { %v1683_v11 = vpop.f32.mrb[38].mxu0 }
 0xeb5   :  { %2589 = vpow2.f32 %v2111_v63  ;;  %v2112_v17 = vmul.f32 -1.442695, %v1683_v11  ;;  %v1685_v56 = vpop.f32.mrb[39].mxu0 }
 0xeb7   :  { %2591 = vpow2.f32 %v2112_v17 }
 0xebf   :  { %v2590_v19 = vpop.eup %2589 }
 0xec0   :  { %v1694_v22 = vadd.f32 1.0, %v2590_v19 }
 0xec1   :  { %v2592_v23 = vpop.eup %2591 }
 0xec2   :  { %2593 = vrcp.f32 %v1694_v22  ;;  %v1695_v60 = vadd.f32 1.0, %v2592_v23 }
 0xec4   :  { %2595 = vrcp.f32 %v1695_v60 }
 0xecc   :  { %v2594_v24 = vpop.eup %2593 }
 0xecd   :  { %v1700_v57 = vmul.f32 %v2594_v24, %v1679_v9 }
 0xece   :  { %v2596_v61 = vpop.eup %2595 }
 0xecf   :  { %v1702_v62 = vmul.f32 %v1700_v57, %v1681_v3  ;;  %v1701_v36 = vmul.f32 %v2596_v61, %v1683_v11 }
 0xed1   :  { %v1703_v39 = vmul.f32 %v1701_v36, %v1685_v56 }
 0xed3   :  { %v1704_v5 = vpack.c.bf16 %v1703_v39, %v1702_v62 }
 0xed5   :  { %2404 = vmatmul.mubr.bf16.vlgmr.msra.gmra.mrb[40].mxu0 %v1704_v5 }
 0xfa8   :  { %v1804_v6 = vpop.f32.mrb[40].mxu0 }
 0xfa9   :  { %v1811_v7 = vadd.f32 %v1804_v6, %v3441_v25  ;;  %v2405_v10 = vpop.f32.mrb[41].mxu0  ;;  %v2545_v25 = vld [vmem:[#allocation11 + $0x24] ss:$8 sps:$4 sm:$0xff]  }
 0xfaa   :  { %v1807_v12 = vpop.f32.mrb[42].mxu0  ;;  %1894 = vmatprep.subr.bf16.mxu1 %v2545_v25 }
 0xfab   :  { %v1812_v14 = vadd.f32 %v1807_v12, %v3444_v28  ;;  %v2406_v15 = vpop.f32.mrb[43].mxu0  ;;  %v1814_v16 = vmul.f32 %v1811_v7, %v1811_v7  ;;  %1895 = vmatpush1.bf16.msra.mxu1 %v2543_v21  ;;  %v2548_v28 = vld [vmem:[#allocation11 + $0x34] ss:$8 sps:$4 sm:$0xff]  }
 0xfac   :  { %1896 = vmatprep.subr.bf16.mxu1 %v2548_v28 }
 0xfad   :  { %v1816_v18 = vsel %vm160_vm0, %v1814_v16, 0.0  ;;  %v1815_v26 = vmul.f32 %v1812_v14, %v1812_v14 }
 0xfae   :  { %1817 = vadd.xlane.f32.xlu0 %v1816_v18 }
 0xfaf   :  { %v1819_v27 = vsel %vm160_vm0, %v1815_v26, 0.0  ;;  %1897 = vmatpush1.bf16.msra.mxu1 %v2546_v13 }
 0xfb0   :  { %1820 = vadd.xlane.f32.xlu1 %v1819_v27 }
0x103b   :  { %v1818_v33 = vpop.xlane.xlu0 %1817 }
0x103c   :  { %v1822_v34 = vmul.f32 0.015625, %v1818_v33 }
0x103d   :  { %v1821_v20 = vpop.xlane.xlu1 %1820 }
0x103e   :  { %v1824_v35 = vadd.f32 1e-05, %v1822_v34  ;;  %v1823_v37 = vmul.f32 0.015625, %v1821_v20 }
0x1040   :  { %2597 = vrsqrt.f32 %v1824_v35  ;;  %v1825_v38 = vadd.f32 1e-05, %v1823_v37 }
0x1042   :  { %2599 = vrsqrt.f32 %v1825_v38 }
0x104a   :  { %v2598_v40 = vpop.eup %2597 }
0x104b   :  { %v1828_v41 = vmul.f32 %v2598_v40, %v1811_v7 }
0x104c   :  { %v2600_v43 = vpop.eup %2599 }
0x104d   :  { %v1829_v44 = vmul.f32 %v2600_v43, %v1812_v14  ;;  %v1836_v49 = vmul.f32 %v2137_v42, %v1828_v41 }
0x104f   :  { %v1837_v45 = vmul.f32 %v2137_v42, %v1829_v44 }
0x1051   :  { %v1838_v46 = vpack.c.bf16 %v1837_v45, %v1836_v49 }
0x1053   :  { %2146 = vmatmul.mubr.msk.bf16.vlgmr.msra.gmra.mrb[28].mxu1 %vm160_vm0, %v1838_v46 }
0x1126   :  { %v1924_v47 = vpop.f32.mrb[28].mxu1 }
0x1127   :  { %v1926_v55 = vpop.f32.mrb[29].mxu1 }
0x1128   :  { %v2149_v0 = vpack.c.bf16 %v1926_v55, %v1924_v47  ;;  %v1928_v51 = vpop.f32.mrb[30].mxu1 }
0x1129   :  { %v1930_v1 = vpop.f32.mrb[31].mxu1 }
0x112a   :  { %1945 = vst [vmem:[#allocation13] sm:$0xff] %v2149_v0  ;;  %v2150_v48 = vpack.c.bf16 %v1930_v1, %v1928_v51 }
0x112c   :  { %1946 = vst [vmem:[#allocation13 + $0x8] sm:$0xff] %v2150_v48 }
0x112d   :  { %2744 = shalt.err (!%p2741_p10)
}
0x112e   :  { %s2745_s25 = scalar_lea.hbm %s3529_s14, 256 }
0x112f   :  { %p2746_p11 = scmp.ne.s32.totalorder %s3529_s14, %s2745_s25  ;;  %p2749_p12 = scmp.lt.u32.totalorder %s2745_s25, %s3529_s14 }
0x1131   :  { %p2751_p13 = pnand %p2749_p12, %p2746_p11 }
0x1133   :  { %2754 = shalt.err (!%p2751_p13)
}
0x1134   :  { %1958 = dma.vmem_to_hbm [thread:$0]  %s1953_s13, 256, %s3529_s14, [#allocation4], %s3532_s16, %s3532_s16, %s2768_s26  }
0x1135   :  { %2763 = dma.done.wait [#allocation4], 256  }
0x1136   :  { %2764 = vsyncadd [#allocation4], 4294967040 }
0x1137   :  { %1962 = vsyncpa [#allocation3], 1 }
0x1138   :  { %1963 = vsyncpa [#allocation6], 1 }
0x1139   :  { %1964 = vsyncpa [#allocation9], 1 }
0x113a   :  { %1965 = vsyncpa [#allocation12], 1 }
0x113b   :  { %1966 = vsyncpa [#allocation4], 1 }

</bundles_post_ra>
